<compile_context>
chip_gen: v5e
topology: v5e:2x2
jax: 0.10.0
libtpu: 0.0.40
codegen_flags: <defaults>
</compile_context>

<pallas_src>
import functools

import jax
import jax.numpy as jnp
import numpy as np
from jax.experimental import pallas as pl
from jax.experimental.pallas import tpu as pltpu

BN_EPS = 1e-5
LANE = 128
TILE_ALIGN = 16                      # bf16-friendly sublane alignment for M tiles
VMEM_BUDGET = 40 * 1024 * 1024       # working-set target (fits v5e/v6e/v7x)
VMEM_LIMIT = 48 * 1024 * 1024        # scoped VMEM limit passed to Mosaic


def _round_up(x, m):
    return (x + m - 1) // m * m


def _select_tile_m(M, sizes, tile_m_max):
    """Pick the M tile: multiple of 16, >=2 grid steps when possible (v7x megacore),
    sized so the double-buffered pass-1 working set stays under VMEM_BUDGET.
    sizes: list of (Kp, Cp) for every (xcol, weight) pair fused into the call."""
    tm = min(_round_up(tile_m_max, TILE_ALIGN), _round_up(M, TILE_ALIGN))
    if tm >= M and M > TILE_ALIGN:          # guarantee >= 2 grid steps
        tm = _round_up((M + 1) // 2, TILE_ALIGN)

    def vmem_est(t):
        b = 0
        for kp, cp in sizes:
            b += 2 * t * kp * 2      # streaming bf16 activation tile, double-buffered
            b += 2 * kp * cp * 2     # resident bf16 weights (counted x2, conservative)
            b += 2 * t * cp * 4      # f32 raw-output tile, double-buffered
            b += 2 * 2 * cp * 4      # per-tile stats
        return b

    while tm > TILE_ALIGN and vmem_est(tm) > VMEM_BUDGET:
        tm = max(TILE_ALIGN, _round_up(tm // 2, TILE_ALIGN))
    return tm


# ----------------------------------------------------------------------------
# Pallas kernel 1: per-tile conv-as-matmul + BN partial statistics
#   for each (x, w) pair:  y = x_tile @ w   (bf16 in, f32 acc)
#   writes y tile and per-tile [sum, sumsq] over rows (per output channel)
# ----------------------------------------------------------------------------
def _matmul_stats_kernel(*refs, n):
    x_refs = refs[:n]
    w_refs = refs[n:2 * n]
    y_refs = refs[2 * n:3 * n]
    s_refs = refs[3 * n:4 * n]
    for xr, wr, yr, sr in zip(x_refs, w_refs, y_refs, s_refs):
        y = jnp.dot(xr[...], wr[...], preferred_element_type=jnp.float32)  # (tm, Cp) f32
        yr[...] = y
        # Direct stats writes (no concatenate / reshape shuffle); XLU reductions hide under MXU.
        sr[0, 0:1, :] = jnp.sum(y, axis=0, keepdims=True)
        sr[0, 1:2, :] = jnp.sum(y * y, axis=0, keepdims=True)


def _pallas_matmul_stats(xws, tm):
    """xws: list of (xcol(M,Kp) bf16, wmat(Kp,Cp) bf16) sharing M and Cp.
    Returns ([y_raw (Mp,Cp) f32, ...], [(sum(Cp), sumsq(Cp)), ...])."""
    n = len(xws)
    M = xws[0][0].shape[0]
    Cp = xws[0][1].shape[1]
    assert tm % 8 == 0, tm
    Mp = _round_up(M, tm)
    nt = Mp // tm

    xs, ws = [], []
    for xcol, wmat in xws:
        # inputs are already bf16; astype is a no-op safety net (no per-forward cast copy)
        xs.append(jnp.pad(xcol.astype(jnp.bfloat16), ((0, Mp - M), (0, 0))))
        ws.append(wmat.astype(jnp.bfloat16))

    in_specs = ([pl.BlockSpec((tm, x.shape[1]), lambda i: (i, 0)) for x in xs]
                + [pl.BlockSpec(w.shape, lambda i: (0, 0)) for w in ws])
    out_shape = tuple([jax.ShapeDtypeStruct((Mp, Cp), jnp.float32) for _ in range(n)]
                      + [jax.ShapeDtypeStruct((nt, 2, Cp), jnp.float32) for _ in range(n)])
    out_specs = tuple([pl.BlockSpec((tm, Cp), lambda i: (i, 0)) for _ in range(n)]
                      + [pl.BlockSpec((1, 2, Cp), lambda i: (i, 0, 0)) for _ in range(n)])

    outs = pl.pallas_call(
        functools.partial(_matmul_stats_kernel, n=n),
        out_shape=out_shape,
        grid=(nt,),
        in_specs=in_specs,
        out_specs=out_specs,
        compiler_params=pltpu.CompilerParams(
            dimension_semantics=("parallel",), vmem_limit_bytes=VMEM_LIMIT),
    )(*xs, *ws)

    ys = list(outs[:n])
    stats = [(jnp.sum(st[:, 0, :], axis=0), jnp.sum(st[:, 1, :], axis=0)) for st in outs[n:]]
    return ys, stats


def _ref_matmul_stats(xws, tm):
    M = xws[0][0].shape[0]
    Mp = _round_up(M, tm)
    ys, stats = [], []
    for xcol, wmat in xws:
        xp = jnp.pad(xcol.astype(jnp.bfloat16), ((0, Mp - M), (0, 0)))
        y = jnp.dot(xp, wmat.astype(jnp.bfloat16), preferred_element_type=jnp.float32)
        ys.append(y)
        stats.append((jnp.sum(y, axis=0), jnp.sum(y * y, axis=0)))
    return ys, stats


# ----------------------------------------------------------------------------
# Fold BN batch statistics (training-mode, biased variance) into one FMA.
# ----------------------------------------------------------------------------
def _fold_bn(stat, m, gamma_p, beta_p):
    s, ss = stat
    mean = s / m
    var = jnp.maximum(ss / m - mean * mean, 0.0)
    scale = gamma_p * jax.lax.rsqrt(var + BN_EPS)
    bias = beta_p - mean * scale
    return jnp.stack([scale, bias]).astype(jnp.float32)  # (2, Cp)


# ----------------------------------------------------------------------------
# Pallas kernel 2: epilogue  out = relu?( y*scale + bias  [+ (res*rscale + rbias)] )
# ----------------------------------------------------------------------------
def _affine_act_kernel(*refs, has_res, has_rsb, relu):
    if has_res and has_rsb:
        y_ref, sb_ref, r_ref, rsb_ref, o_ref = refs
    elif has_res:
        y_ref, sb_ref, r_ref, o_ref = refs
        rsb_ref = None
    else:
        y_ref, sb_ref, o_ref = refs
        r_ref = rsb_ref = None

    y = y_ref[...] * sb_ref[0:1, :] + sb_ref[1:2, :]
    if has_res:
        r = r_ref[...].astype(jnp.float32)
        if has_rsb:
            r = r * rsb_ref[0:1, :] + rsb_ref[1:2, :]
        y = y + r
    if relu:
        y = jnp.maximum(y, 0.0)
    o_ref[...] = y.astype(o_ref.dtype)


def _pallas_affine_act(y_raw, sb, residual=None, res_sb=None, relu=True, tm=256,
                       out_dtype=jnp.float32):
    Mp, Cp = y_raw.shape
    assert tm % 8 == 0 and Mp % tm == 0, (Mp, tm)     # no silent row dropping
    nt = Mp // tm
    has_res = residual is not None
    has_rsb = res_sb is not None

    inputs = [y_raw, sb.astype(jnp.float32)]
    in_specs = [pl.BlockSpec((tm, Cp), lambda i: (i, 0)),
                pl.BlockSpec((2, Cp), lambda i: (0, 0))]
    if has_res:
        inputs.append(residual)
        in_specs.append(pl.BlockSpec((tm, Cp), lambda i: (i, 0)))
        if has_rsb:
            inputs.append(res_sb.astype(jnp.float32))
            in_specs.append(pl.BlockSpec((2, Cp), lambda i: (0, 0)))

    return pl.pallas_call(
        functools.partial(_affine_act_kernel, has_res=has_res, has_rsb=has_rsb, relu=relu),
        out_shape=jax.ShapeDtypeStruct((Mp, Cp), out_dtype),
        grid=(nt,),
        in_specs=in_specs,
        out_specs=pl.BlockSpec((tm, Cp), lambda i: (i, 0)),
        compiler_params=pltpu.CompilerParams(
            dimension_semantics=("parallel",), vmem_limit_bytes=VMEM_LIMIT),
    )(*inputs)


def _ref_affine_act(y_raw, sb, residual=None, res_sb=None, relu=True, tm=256,
                    out_dtype=jnp.float32):
    y = y_raw * sb[0:1, :] + sb[1:2, :]
    if residual is not None:
        r = residual.astype(jnp.float32)
        if res_sb is not None:
            r = r * res_sb[0:1, :] + res_sb[1:2, :]
        y = y + r
    if relu:
        y = jnp.maximum(y, 0.0)
    return y.astype(out_dtype)


# ----------------------------------------------------------------------------
# Plain-JAX glue: im2col (K tail-padded to 128, dtype preserved) and weight layout prep
# ----------------------------------------------------------------------------
def _im2col(x_nhwc, ksize, stride, pad, k_align=LANE):
    N, H, W, C = x_nhwc.shape
    xp = jnp.pad(x_nhwc, ((0, 0), (pad, pad), (pad, pad), (0, 0)))
    Ho = (H + 2 * pad - ksize) // stride + 1
    Wo = (W + 2 * pad - ksize) // stride + 1
    cols = []
    for kh in range(ksize):
        for kw in range(ksize):
            cols.append(xp[:, kh:kh + stride * Ho:stride, kw:kw + stride * Wo:stride, :])
    col = jnp.concatenate(cols, axis=-1).reshape(N * Ho * Wo, ksize * ksize * C)
    K = col.shape[1]
    Kp = _round_up(K, k_align)
    return jnp.pad(col, ((0, 0), (0, Kp - K))), (N, Ho, Wo)


def _prep_weight(w_oihw, cin_tensor, cp_out, k_align=LANE):
    """OIHW -> (kh*kw*cin_tensor rounded to 128, cp_out) bf16, matching _im2col column order."""
    cout, cin, kh, kw = w_oihw.shape
    w = jnp.pad(w_oihw, ((0, cp_out - cout), (0, cin_tensor - cin), (0, 0), (0, 0)))
    wm = jnp.transpose(w, (2, 3, 1, 0)).reshape(kh * kw * cin_tensor, cp_out)
    kp = _round_up(wm.shape[0], k_align)
    return jnp.pad(wm, ((0, kp - wm.shape[0]), (0, 0))).astype(jnp.bfloat16)


def _pad_vec(v, cp):
    return jnp.pad(v.astype(jnp.float32), (0, cp - v.shape[0]))


def prepare_params(raw, in_channels, out_channels, stride):
    """Hoisted, one-time weight/affine layout conversion (done outside the hot forward).
    Weights are stored bf16 so no per-forward cast copy is needed."""
    cp = _round_up(out_channels, LANE)
    p = {
        "w1m": _prep_weight(raw["w1"], in_channels, cp),
        "g1p": _pad_vec(raw["g1"], cp), "b1p": _pad_vec(raw["b1"], cp),
        "w2m": _prep_weight(raw["w2"], cp, cp),
        "g2p": _pad_vec(raw["g2"], cp), "b2p": _pad_vec(raw["b2"], cp),
    }
    if stride != 1 or in_channels != out_channels:
        p["wsm"] = _prep_weight(raw["ws"], in_channels, cp)
        p["gsp"] = _pad_vec(raw["gs"], cp)
        p["bsp"] = _pad_vec(raw["bs"], cp)
    return p


# ----------------------------------------------------------------------------
# BasicBlock2D forward (NCHW in / NCHW out, PyTorch training-mode BN semantics)
# NOTE: matmul operands run in bf16 (f32 MXU accumulation) -> ~1e-2 relative deviation
#       from PyTorch's f32 convolutions is expected.
# ----------------------------------------------------------------------------
def basic_block_2d(x_nchw, params, *, out_channels, stride, tile_m=512, use_pallas=True):
    matmul_stats = _pallas_matmul_stats if use_pallas else _ref_matmul_stats
    affine_act = _pallas_affine_act if use_pallas else _ref_affine_act

    # NCHW -> NHWC, cast once to bf16 for the whole matmul-operand path
    x = jnp.transpose(x_nchw, (0, 2, 3, 1)).astype(jnp.bfloat16)
    N, H, W, Cin = x.shape
    Cout = out_channels
    Cp = params["w1m"].shape[1]
    has_proj = "wsm" in params

    # ---- conv1 (3x3, stride, pad 1) + bn1 + relu : matmul+stats pass, then folded affine
    xcol1, (_, Ho, Wo) = _im2col(x, 3, stride, 1)
    M = N * Ho * Wo
    Kp1 = xcol1.shape[1]
    tm1 = _select_tile_m(M, [(Kp1, Cp)], tile_m)

    (y1_raw,), (st1,) = matmul_stats([(xcol1, params["w1m"])], tm1)
    # conv1 epilogue writes bf16: halves the y1 (and its 9x im2col) HBM traffic; conv2
    # consumes bf16 anyway.
    y1 = affine_act(y1_raw, _fold_bn(st1, M, params["g1p"], params["b1p"]),
                    relu=True, tm=tm1, out_dtype=jnp.bfloat16)
    y1 = y1[:M].reshape(N, Ho, Wo, Cp)

    # ---- conv2 (3x3, stride 1, pad 1) + bn2, shortcut fused, residual add + relu epilogue
    xcol2, _ = _im2col(y1, 3, 1, 1)
    Kp2 = xcol2.shape[1]
    if has_proj:
        xcols, _ = _im2col(x, 1, stride, 0)
        tm2 = _select_tile_m(M, [(Kp2, Cp), (xcols.shape[1], Cp)], tile_m)
        (y2_raw, sc_raw), (st2, sts) = matmul_stats(
            [(xcol2, params["w2m"]), (xcols, params["wsm"])], tm2)
        out = affine_act(y2_raw, _fold_bn(st2, M, params["g2p"], params["b2p"]),
                         residual=sc_raw,
                         res_sb=_fold_bn(sts, M, params["gsp"], params["bsp"]),
                         relu=True, tm=tm2, out_dtype=jnp.float32)
    else:
        tm2 = _select_tile_m(M, [(Kp2, Cp)], tile_m)
        (y2_raw,), (st2,) = matmul_stats([(xcol2, params["w2m"])], tm2)
        Mp = y2_raw.shape[0]
        res = jnp.pad(x.reshape(N * H * W, Cin), ((0, Mp - N * H * W), (0, Cp - Cin)))
        out = affine_act(y2_raw, _fold_bn(st2, M, params["g2p"], params["b2p"]),
                         residual=res, res_sb=None, relu=True, tm=tm2, out_dtype=jnp.float32)

    out = out[:M, :Cout].reshape(N, Ho, Wo, Cout)
    return jnp.transpose(out, (0, 3, 1, 2)).astype(jnp.float32)     # NHWC -> NCHW


# ----------------------------------------------------------------------------
# Deterministic synthetic parameters (shapes from BasicBlock2D.__init__)
# ----------------------------------------------------------------------------
def init_params(key, in_channels, out_channels, stride):
    ks = jax.random.split(key, 8)
    params = {
        "w1": 0.1 * jax.random.normal(ks[0], (out_channels, in_channels, 3, 3), jnp.float32),
        "g1": 1.0 + 0.1 * jax.random.normal(ks[1], (out_channels,), jnp.float32),
        "b1": 0.1 * jax.random.normal(ks[2], (out_channels,), jnp.float32),
        "w2": 0.1 * jax.random.normal(ks[3], (out_channels, out_channels, 3, 3), jnp.float32),
        "g2": 1.0 + 0.1 * jax.random.normal(ks[4], (out_channels,), jnp.float32),
        "b2": 0.1 * jax.random.normal(ks[5], (out_channels,), jnp.float32),
    }
    if stride != 1 or in_channels != out_channels:
        params["ws"] = 0.1 * jax.random.normal(ks[6], (out_channels, in_channels, 1, 1),
                                               jnp.float32)
        params["gs"] = jnp.ones((out_channels,), jnp.float32)
        params["bs"] = 0.1 * jax.random.normal(ks[7], (out_channels,), jnp.float32)
    return params


if __name__ == "__main__":
    key = jax.random.PRNGKey(0)
    k_x1, k_p1, k_x2, k_p2 = jax.random.split(key, 4)

    # Case 1: projection shortcut (stride 2, Cin != Cout); tile_m=64 -> multi-tile grid,
    # exercising cross-tile BN stats accumulation and the fused-shortcut pass-1 path.
    N, Cin, H, W = 2, 4, 16, 16
    Cout, stride = 8, 2
    x1 = jax.random.normal(k_x1, (N, Cin, H, W), jnp.float32)
    p1 = prepare_params(init_params(k_p1, Cin, Cout, stride), Cin, Cout, stride)

    fwd1 = jax.jit(functools.partial(basic_block_2d, out_channels=Cout, stride=stride,
                                     tile_m=64, use_pallas=True))
    out1 = jax.block_until_ready(fwd1(x1, p1))
    ref1 = jax.block_until_ready(
        basic_block_2d(x1, p1, out_channels=Cout, stride=stride, tile_m=64, use_pallas=False))
    assert out1.shape == (N, Cout, H // stride, W // stride), out1.shape
    np.testing.assert_allclose(np.asarray(out1), np.asarray(ref1), rtol=2e-2, atol=2e-2)

    # Case 2: identity shortcut (stride 1, Cin == Cout); tile selection splits M into >=2 tiles.
    C2 = 8
    x2 = jax.random.normal(k_x2, (N, C2, H, W), jnp.float32)
    p2 = prepare_params(init_params(k_p2, C2, C2, 1), C2, C2, 1)

    fwd2 = jax.jit(functools.partial(basic_block_2d, out_channels=C2, stride=1,
                                     tile_m=512, use_pallas=True))
    out2 = jax.block_until_ready(fwd2(x2, p2))
    ref2 = jax.block_until_ready(
        basic_block_2d(x2, p2, out_channels=C2, stride=1, tile_m=512, use_pallas=False))
    assert out2.shape == (N, C2, H, W), out2.shape
    np.testing.assert_allclose(np.asarray(out2), np.asarray(ref2), rtol=2e-2, atol=2e-2)

    print("KERNEL_OK")
</pallas_src>

<mosaic_0001>
module attributes {stable_mosaic.version = 11 : i64} {
  func.func @_matmul_stats_kernel(%arg0: i32, %arg1: memref<64x128xbf16, #tpu.memory_space<vmem>>, %arg2: memref<128x128xbf16, #tpu.memory_space<vmem>>, %arg3: memref<64x128xf32, #tpu.memory_space<vmem>>, %arg4: memref<1x2x128xf32, #tpu.memory_space<vmem>>) attributes {dimension_semantics = [#tpu.dimension_semantics<parallel>], iteration_bounds = array<i64: 2>, scalar_prefetch = 0 : i64, scratch_operands = 0 : i64, tpu.core_type = #tpu.core_type<tc>, window_params = [{transform_indices = @transform_0, window_bounds = array<i64: 64, 128>}, {pipeline_mode = #tpu.pipeline_mode<synchronous>, transform_indices = @transform_1, window_bounds = array<i64: 128, 128>}, {transform_indices = @transform_2, window_bounds = array<i64: 64, 128>}, {transform_indices = @transform_3, window_bounds = array<i64: 1, 2, 128>}]} {
    %c0 = arith.constant 0 : index
    %c0_0 = arith.constant 0 : index
    %0 = vector.load %arg1[%c0, %c0_0] : memref<64x128xbf16, #tpu.memory_space<vmem>>, vector<64x128xbf16>
    %c0_1 = arith.constant 0 : index
    %c0_2 = arith.constant 0 : index
    %1 = vector.load %arg2[%c0_1, %c0_2] : memref<128x128xbf16, #tpu.memory_space<vmem>>, vector<128x128xbf16>
    %cst = arith.constant dense<0.000000e+00> : vector<64x128xf32>
    %2 = tpu.matmul %0, %1, %cst {dimension_numbers = #tpu.dot_dimension_numbers<[1], [0], [0], [1], [0, 0, 1, 1], [], []>} : vector<64x128xbf16>, vector<128x128xbf16>, vector<64x128xf32> -> vector<64x128xf32>
    %c0_3 = arith.constant 0 : index
    %c0_4 = arith.constant 0 : index
    %3 = vector.load %arg3[%c0_3, %c0_4] : memref<64x128xf32, #tpu.memory_space<vmem>>, vector<64x128xf32>
    tpu.vector_store %arg3[%c0_3, %c0_4], %2 {strides = array<i32>} : memref<64x128xf32, #tpu.memory_space<vmem>>, vector<64x128xf32>,
    %cst_5 = arith.constant dense<0.000000e+00> : vector<128xf32>
    %4 = vector.multi_reduction <add>, %2, %cst_5 [0] : vector<64x128xf32> to vector<128xf32>
    %5 = vector.shape_cast %4 : vector<128xf32> to vector<1x128xf32>
    %c0_6 = arith.constant 0 : index
    %c0_7 = arith.constant 0 : index
    %c0_8 = arith.constant 0 : index
    %6 = vector.load %arg4[%c0_6, %c0_7, %c0_8] : memref<1x2x128xf32, #tpu.memory_space<vmem>>, vector<1x1x128xf32>
    %7 = vector.shape_cast %6 : vector<1x1x128xf32> to vector<1x128xf32>
    %8 = vector.shape_cast %5 : vector<1x128xf32> to vector<1x1x128xf32>
    tpu.vector_store %arg4[%c0_6, %c0_7, %c0_8], %8 {strides = array<i32>} : memref<1x2x128xf32, #tpu.memory_space<vmem>>, vector<1x1x128xf32>,
    %9 = arith.mulf %2, %2 : vector<64x128xf32>
    %cst_9 = arith.constant dense<0.000000e+00> : vector<128xf32>
    %10 = vector.multi_reduction <add>, %9, %cst_9 [0] : vector<64x128xf32> to vector<128xf32>
    %11 = vector.shape_cast %10 : vector<128xf32> to vector<1x128xf32>
    %c0_10 = arith.constant 0 : index
    %c1 = arith.constant 1 : index
    %c0_11 = arith.constant 0 : index
    %12 = vector.load %arg4[%c0_10, %c1, %c0_11] : memref<1x2x128xf32, #tpu.memory_space<vmem>>, vector<1x1x128xf32>
    %13 = vector.shape_cast %12 : vector<1x1x128xf32> to vector<1x128xf32>
    %14 = vector.shape_cast %11 : vector<1x128xf32> to vector<1x1x128xf32>
    tpu.vector_store %arg4[%c0_10, %c1, %c0_11], %14 {strides = array<i32>} : memref<1x2x128xf32, #tpu.memory_space<vmem>>, vector<1x1x128xf32>,
    return
  }
  func.func @transform_0(%arg0: i32) -> (i32, i32) {
    %c0_i32 = arith.constant 0 : i32
    %c0_i32_0 = arith.constant 0 : i32
    return %arg0, %c0_i32 : i32, i32
  }
  func.func @transform_1(%arg0: i32) -> (i32, i32) {
    %c0_i32 = arith.constant 0 : i32
    %c0_i32_0 = arith.constant 0 : i32
    %c0_i32_1 = arith.constant 0 : i32
    return %c0_i32, %c0_i32_0 : i32, i32
  }
  func.func @transform_2(%arg0: i32) -> (i32, i32) {
    %c0_i32 = arith.constant 0 : i32
    %c0_i32_0 = arith.constant 0 : i32
    return %arg0, %c0_i32 : i32, i32
  }
  func.func @transform_3(%arg0: i32) -> (i32, i32, i32) {
    %c0_i32 = arith.constant 0 : i32
    %c0_i32_0 = arith.constant 0 : i32
    %c0_i32_1 = arith.constant 0 : i32
    return %arg0, %c0_i32, %c0_i32_0 : i32, i32, i32
  }
}

module attributes {stable_mosaic.version = 11 : i64} {
  func.func @_affine_act_kernel(%arg0: i32, %arg1: memref<64x128xf32, #tpu.memory_space<vmem>>, %arg2: memref<2x128xf32, #tpu.memory_space<vmem>>, %arg3: memref<64x128xbf16, #tpu.memory_space<vmem>>) attributes {dimension_semantics = [#tpu.dimension_semantics<parallel>], iteration_bounds = array<i64: 2>, scalar_prefetch = 0 : i64, scratch_operands = 0 : i64, tpu.core_type = #tpu.core_type<tc>, window_params = [{transform_indices = @transform_0, window_bounds = array<i64: 64, 128>}, {pipeline_mode = #tpu.pipeline_mode<synchronous>, transform_indices = @transform_1, window_bounds = array<i64: 2, 128>}, {transform_indices = @transform_2, window_bounds = array<i64: 64, 128>}]} {
    %c0 = arith.constant 0 : index
    %c0_0 = arith.constant 0 : index
    %0 = vector.load %arg1[%c0, %c0_0] : memref<64x128xf32, #tpu.memory_space<vmem>>, vector<64x128xf32>
    %c0_1 = arith.constant 0 : index
    %c0_2 = arith.constant 0 : index
    %1 = vector.load %arg2[%c0_1, %c0_2] : memref<2x128xf32, #tpu.memory_space<vmem>>, vector<1x128xf32>
    %2 = vector.broadcast %1 : vector<1x128xf32> to vector<64x128xf32>
    %3 = arith.mulf %0, %2 : vector<64x128xf32>
    %c1 = arith.constant 1 : index
    %c0_3 = arith.constant 0 : index
    %4 = vector.load %arg2[%c1, %c0_3] : memref<2x128xf32, #tpu.memory_space<vmem>>, vector<1x128xf32>
    %5 = vector.broadcast %4 : vector<1x128xf32> to vector<64x128xf32>
    %6 = arith.addf %3, %5 : vector<64x128xf32>
    %cst = arith.constant 0.000000e+00 : f32
    %7 = vector.broadcast %cst : f32 to vector<64x128xf32>
    %8 = arith.maximumf %6, %7 : vector<64x128xf32>
    %9 = arith.truncf %8 : vector<64x128xf32> to vector<64x128xbf16>
    %c0_4 = arith.constant 0 : index
    %c0_5 = arith.constant 0 : index
    %10 = vector.load %arg3[%c0_4, %c0_5] : memref<64x128xbf16, #tpu.memory_space<vmem>>, vector<64x128xbf16>
    tpu.vector_store %arg3[%c0_4, %c0_5], %9 {strides = array<i32>} : memref<64x128xbf16, #tpu.memory_space<vmem>>, vector<64x128xbf16>,
    return
  }
  func.func @transform_0(%arg0: i32) -> (i32, i32) {
    %c0_i32 = arith.constant 0 : i32
    %c0_i32_0 = arith.constant 0 : i32
    return %arg0, %c0_i32 : i32, i32
  }
  func.func @transform_1(%arg0: i32) -> (i32, i32) {
    %c0_i32 = arith.constant 0 : i32
    %c0_i32_0 = arith.constant 0 : i32
    %c0_i32_1 = arith.constant 0 : i32
    return %c0_i32, %c0_i32_0 : i32, i32
  }
  func.func @transform_2(%arg0: i32) -> (i32, i32) {
    %c0_i32 = arith.constant 0 : i32
    %c0_i32_0 = arith.constant 0 : i32
    return %arg0, %c0_i32 : i32, i32
  }
}

module attributes {stable_mosaic.version = 11 : i64} {
  func.func @_matmul_stats_kernel(%arg0: i32, %arg1: memref<64x1152xbf16, #tpu.memory_space<vmem>>, %arg2: memref<64x128xbf16, #tpu.memory_space<vmem>>, %arg3: memref<1152x128xbf16, #tpu.memory_space<vmem>>, %arg4: memref<128x128xbf16, #tpu.memory_space<vmem>>, %arg5: memref<64x128xf32, #tpu.memory_space<vmem>>, %arg6: memref<64x128xf32, #tpu.memory_space<vmem>>, %arg7: memref<1x2x128xf32, #tpu.memory_space<vmem>>, %arg8: memref<1x2x128xf32, #tpu.memory_space<vmem>>) attributes {dimension_semantics = [#tpu.dimension_semantics<parallel>], iteration_bounds = array<i64: 2>, scalar_prefetch = 0 : i64, scratch_operands = 0 : i64, tpu.core_type = #tpu.core_type<tc>, window_params = [{transform_indices = @transform_0, window_bounds = array<i64: 64, 1152>}, {transform_indices = @transform_1, window_bounds = array<i64: 64, 128>}, {pipeline_mode = #tpu.pipeline_mode<synchronous>, transform_indices = @transform_2, window_bounds = array<i64: 1152, 128>}, {pipeline_mode = #tpu.pipeline_mode<synchronous>, transform_indices = @transform_3, window_bounds = array<i64: 128, 128>}, {transform_indices = @transform_4, window_bounds = array<i64: 64, 128>}, {transform_indices = @transform_5, window_bounds = array<i64: 64, 128>}, {transform_indices = @transform_6, window_bounds = array<i64: 1, 2, 128>}, {transform_indices = @transform_7, window_bounds = array<i64: 1, 2, 128>}]} {
    %c0 = arith.constant 0 : index
    %c0_0 = arith.constant 0 : index
    %0 = vector.load %arg1[%c0, %c0_0] : memref<64x1152xbf16, #tpu.memory_space<vmem>>, vector<64x1152xbf16>
    %c0_1 = arith.constant 0 : index
    %c0_2 = arith.constant 0 : index
    %1 = vector.load %arg3[%c0_1, %c0_2] : memref<1152x128xbf16, #tpu.memory_space<vmem>>, vector<1152x128xbf16>
    %cst = arith.constant dense<0.000000e+00> : vector<64x128xf32>
    %2 = tpu.matmul %0, %1, %cst {dimension_numbers = #tpu.dot_dimension_numbers<[1], [0], [0], [1], [0, 0, 1, 1], [], []>} : vector<64x1152xbf16>, vector<1152x128xbf16>, vector<64x128xf32> -> vector<64x128xf32>
    %c0_3 = arith.constant 0 : index
    %c0_4 = arith.constant 0 : index
    %3 = vector.load %arg5[%c0_3, %c0_4] : memref<64x128xf32, #tpu.memory_space<vmem>>, vector<64x128xf32>
    tpu.vector_store %arg5[%c0_3, %c0_4], %2 {strides = array<i32>} : memref<64x128xf32, #tpu.memory_space<vmem>>, vector<64x128xf32>,
    %cst_5 = arith.constant dense<0.000000e+00> : vector<128xf32>
    %4 = vector.multi_reduction <add>, %2, %cst_5 [0] : vector<64x128xf32> to vector<128xf32>
    %5 = vector.shape_cast %4 : vector<128xf32> to vector<1x128xf32>
    %c0_6 = arith.constant 0 : index
    %c0_7 = arith.constant 0 : index
    %c0_8 = arith.constant 0 : index
    %6 = vector.load %arg7[%c0_6, %c0_7, %c0_8] : memref<1x2x128xf32, #tpu.memory_space<vmem>>, vector<1x1x128xf32>
    %7 = vector.shape_cast %6 : vector<1x1x128xf32> to vector<1x128xf32>
    %8 = vector.shape_cast %5 : vector<1x128xf32> to vector<1x1x128xf32>
    tpu.vector_store %arg7[%c0_6, %c0_7, %c0_8], %8 {strides = array<i32>} : memref<1x2x128xf32, #tpu.memory_space<vmem>>, vector<1x1x128xf32>,
    %9 = arith.mulf %2, %2 : vector<64x128xf32>
    %cst_9 = arith.constant dense<0.000000e+00> : vector<128xf32>
    %10 = vector.multi_reduction <add>, %9, %cst_9 [0] : vector<64x128xf32> to vector<128xf32>
    %11 = vector.shape_cast %10 : vector<128xf32> to vector<1x128xf32>
    %c0_10 = arith.constant 0 : index
    %c1 = arith.constant 1 : index
    %c0_11 = arith.constant 0 : index
    %12 = vector.load %arg7[%c0_10, %c1, %c0_11] : memref<1x2x128xf32, #tpu.memory_space<vmem>>, vector<1x1x128xf32>
    %13 = vector.shape_cast %12 : vector<1x1x128xf32> to vector<1x128xf32>
    %14 = vector.shape_cast %11 : vector<1x128xf32> to vector<1x1x128xf32>
    tpu.vector_store %arg7[%c0_10, %c1, %c0_11], %14 {strides = array<i32>} : memref<1x2x128xf32, #tpu.memory_space<vmem>>, vector<1x1x128xf32>,
    %c0_12 = arith.constant 0 : index
    %c0_13 = arith.constant 0 : index
    %15 = vector.load %arg2[%c0_12, %c0_13] : memref<64x128xbf16, #tpu.memory_space<vmem>>, vector<64x128xbf16>
    %c0_14 = arith.constant 0 : index
    %c0_15 = arith.constant 0 : index
    %16 = vector.load %arg4[%c0_14, %c0_15] : memref<128x128xbf16, #tpu.memory_space<vmem>>, vector<128x128xbf16>
    %cst_16 = arith.constant dense<0.000000e+00> : vector<64x128xf32>
    %17 = tpu.matmul %15, %16, %cst_16 {dimension_numbers = #tpu.dot_dimension_numbers<[1], [0], [0], [1], [0, 0, 1, 1], [], []>} : vector<64x128xbf16>, vector<128x128xbf16>, vector<64x128xf32> -> vector<64x128xf32>
    %c0_17 = arith.constant 0 : index
    %c0_18 = arith.constant 0 : index
    %18 = vector.load %arg6[%c0_17, %c0_18] : memref<64x128xf32, #tpu.memory_space<vmem>>, vector<64x128xf32>
    tpu.vector_store %arg6[%c0_17, %c0_18], %17 {strides = array<i32>} : memref<64x128xf32, #tpu.memory_space<vmem>>, vector<64x128xf32>,
    %cst_19 = arith.constant dense<0.000000e+00> : vector<128xf32>
    %19 = vector.multi_reduction <add>, %17, %cst_19 [0] : vector<64x128xf32> to vector<128xf32>
    %20 = vector.shape_cast %19 : vector<128xf32> to vector<1x128xf32>
    %c0_20 = arith.constant 0 : index
    %c0_21 = arith.constant 0 : index
    %c0_22 = arith.constant 0 : index
    %21 = vector.load %arg8[%c0_20, %c0_21, %c0_22] : memref<1x2x128xf32, #tpu.memory_space<vmem>>, vector<1x1x128xf32>
    %22 = vector.shape_cast %21 : vector<1x1x128xf32> to vector<1x128xf32>
    %23 = vector.shape_cast %20 : vector<1x128xf32> to vector<1x1x128xf32>
    tpu.vector_store %arg8[%c0_20, %c0_21, %c0_22], %23 {strides = array<i32>} : memref<1x2x128xf32, #tpu.memory_space<vmem>>, vector<1x1x128xf32>,
    %24 = arith.mulf %17, %17 : vector<64x128xf32>
    %cst_23 = arith.constant dense<0.000000e+00> : vector<128xf32>
    %25 = vector.multi_reduction <add>, %24, %cst_23 [0] : vector<64x128xf32> to vector<128xf32>
    %26 = vector.shape_cast %25 : vector<128xf32> to vector<1x128xf32>
    %c0_24 = arith.constant 0 : index
    %c1_25 = arith.constant 1 : index
    %c0_26 = arith.constant 0 : index
    %27 = vector.load %arg8[%c0_24, %c1_25, %c0_26] : memref<1x2x128xf32, #tpu.memory_space<vmem>>, vector<1x1x128xf32>
    %28 = vector.shape_cast %27 : vector<1x1x128xf32> to vector<1x128xf32>
    %29 = vector.shape_cast %26 : vector<1x128xf32> to vector<1x1x128xf32>
    tpu.vector_store %arg8[%c0_24, %c1_25, %c0_26], %29 {strides = array<i32>} : memref<1x2x128xf32, #tpu.memory_space<vmem>>, vector<1x1x128xf32>,
    return
  }
  func.func @transform_0(%arg0: i32) -> (i32, i32) {
    %c0_i32 = arith.constant 0 : i32
    %c0_i32_0 = arith.constant 0 : i32
    return %arg0, %c0_i32 : i32, i32
  }
  func.func @transform_1(%arg0: i32) -> (i32, i32) {
    %c0_i32 = arith.constant 0 : i32
    %c0_i32_0 = arith.constant 0 : i32
    return %arg0, %c0_i32 : i32, i32
  }
  func.func @transform_2(%arg0: i32) -> (i32, i32) {
    %c0_i32 = arith.constant 0 : i32
    %c0_i32_0 = arith.constant 0 : i32
    %c0_i32_1 = arith.constant 0 : i32
    return %c0_i32, %c0_i32_0 : i32, i32
  }
  func.func @transform_3(%arg0: i32) -> (i32, i32) {
    %c0_i32 = arith.constant 0 : i32
    %c0_i32_0 = arith.constant 0 : i32
    %c0_i32_1 = arith.constant 0 : i32
    return %c0_i32, %c0_i32_0 : i32, i32
  }
  func.func @transform_4(%arg0: i32) -> (i32, i32) {
    %c0_i32 = arith.constant 0 : i32
    %c0_i32_0 = arith.constant 0 : i32
    return %arg0, %c0_i32 : i32, i32
  }
  func.func @transform_5(%arg0: i32) -> (i32, i32) {
    %c0_i32 = arith.constant 0 : i32
    %c0_i32_0 = arith.constant 0 : i32
    return %arg0, %c0_i32 : i32, i32
  }
  func.func @transform_6(%arg0: i32) -> (i32, i32, i32) {
    %c0_i32 = arith.constant 0 : i32
    %c0_i32_0 = arith.constant 0 : i32
    %c0_i32_1 = arith.constant 0 : i32
    return %arg0, %c0_i32, %c0_i32_0 : i32, i32, i32
  }
  func.func @transform_7(%arg0: i32) -> (i32, i32, i32) {
    %c0_i32 = arith.constant 0 : i32
    %c0_i32_0 = arith.constant 0 : i32
    %c0_i32_1 = arith.constant 0 : i32
    return %arg0, %c0_i32, %c0_i32_0 : i32, i32, i32
  }
}

module attributes {stable_mosaic.version = 11 : i64} {
  func.func @_affine_act_kernel(%arg0: i32, %arg1: memref<64x128xf32, #tpu.memory_space<vmem>>, %arg2: memref<2x128xf32, #tpu.memory_space<vmem>>, %arg3: memref<64x128xf32, #tpu.memory_space<vmem>>, %arg4: memref<2x128xf32, #tpu.memory_space<vmem>>, %arg5: memref<64x128xf32, #tpu.memory_space<vmem>>) attributes {dimension_semantics = [#tpu.dimension_semantics<parallel>], iteration_bounds = array<i64: 2>, scalar_prefetch = 0 : i64, scratch_operands = 0 : i64, tpu.core_type = #tpu.core_type<tc>, window_params = [{transform_indices = @transform_0, window_bounds = array<i64: 64, 128>}, {pipeline_mode = #tpu.pipeline_mode<synchronous>, transform_indices = @transform_1, window_bounds = array<i64: 2, 128>}, {transform_indices = @transform_2, window_bounds = array<i64: 64, 128>}, {pipeline_mode = #tpu.pipeline_mode<synchronous>, transform_indices = @transform_3, window_bounds = array<i64: 2, 128>}, {transform_indices = @transform_4, window_bounds = array<i64: 64, 128>}]} {
    %c0 = arith.constant 0 : index
    %c0_0 = arith.constant 0 : index
    %0 = vector.load %arg1[%c0, %c0_0] : memref<64x128xf32, #tpu.memory_space<vmem>>, vector<64x128xf32>
    %c0_1 = arith.constant 0 : index
    %c0_2 = arith.constant 0 : index
    %1 = vector.load %arg2[%c0_1, %c0_2] : memref<2x128xf32, #tpu.memory_space<vmem>>, vector<1x128xf32>
    %2 = vector.broadcast %1 : vector<1x128xf32> to vector<64x128xf32>
    %3 = arith.mulf %0, %2 : vector<64x128xf32>
    %c1 = arith.constant 1 : index
    %c0_3 = arith.constant 0 : index
    %4 = vector.load %arg2[%c1, %c0_3] : memref<2x128xf32, #tpu.memory_space<vmem>>, vector<1x128xf32>
    %5 = vector.broadcast %4 : vector<1x128xf32> to vector<64x128xf32>
    %6 = arith.addf %3, %5 : vector<64x128xf32>
    %c0_4 = arith.constant 0 : index
    %c0_5 = arith.constant 0 : index
    %7 = vector.load %arg3[%c0_4, %c0_5] : memref<64x128xf32, #tpu.memory_space<vmem>>, vector<64x128xf32>
    %c0_6 = arith.constant 0 : index
    %c0_7 = arith.constant 0 : index
    %8 = vector.load %arg4[%c0_6, %c0_7] : memref<2x128xf32, #tpu.memory_space<vmem>>, vector<1x128xf32>
    %9 = vector.broadcast %8 : vector<1x128xf32> to vector<64x128xf32>
    %10 = arith.mulf %7, %9 : vector<64x128xf32>
    %c1_8 = arith.constant 1 : index
    %c0_9 = arith.constant 0 : index
    %11 = vector.load %arg4[%c1_8, %c0_9] : memref<2x128xf32, #tpu.memory_space<vmem>>, vector<1x128xf32>
    %12 = vector.broadcast %11 : vector<1x128xf32> to vector<64x128xf32>
    %13 = arith.addf %10, %12 : vector<64x128xf32>
    %14 = arith.addf %6, %13 : vector<64x128xf32>
    %cst = arith.constant 0.000000e+00 : f32
    %15 = vector.broadcast %cst : f32 to vector<64x128xf32>
    %16 = arith.maximumf %14, %15 : vector<64x128xf32>
    %c0_10 = arith.constant 0 : index
    %c0_11 = arith.constant 0 : index
    %17 = vector.load %arg5[%c0_10, %c0_11] : memref<64x128xf32, #tpu.memory_space<vmem>>, vector<64x128xf32>
    tpu.vector_store %arg5[%c0_10, %c0_11], %16 {strides = array<i32>} : memref<64x128xf32, #tpu.memory_space<vmem>>, vector<64x128xf32>,
    return
  }
  func.func @transform_0(%arg0: i32) -> (i32, i32) {
    %c0_i32 = arith.constant 0 : i32
    %c0_i32_0 = arith.constant 0 : i32
    return %arg0, %c0_i32 : i32, i32
  }
  func.func @transform_1(%arg0: i32) -> (i32, i32) {
    %c0_i32 = arith.constant 0 : i32
    %c0_i32_0 = arith.constant 0 : i32
    %c0_i32_1 = arith.constant 0 : i32
    return %c0_i32, %c0_i32_0 : i32, i32
  }
  func.func @transform_2(%arg0: i32) -> (i32, i32) {
    %c0_i32 = arith.constant 0 : i32
    %c0_i32_0 = arith.constant 0 : i32
    return %arg0, %c0_i32 : i32, i32
  }
  func.func @transform_3(%arg0: i32) -> (i32, i32) {
    %c0_i32 = arith.constant 0 : i32
    %c0_i32_0 = arith.constant 0 : i32
    %c0_i32_1 = arith.constant 0 : i32
    return %c0_i32, %c0_i32_0 : i32, i32
  }
  func.func @transform_4(%arg0: i32) -> (i32, i32) {
    %c0_i32 = arith.constant 0 : i32
    %c0_i32_0 = arith.constant 0 : i32
    return %arg0, %c0_i32 : i32, i32
  }
}

</mosaic_0001>

<bundles_post_ra>
// kernel: basic_block_2d.5
= control target key start
LH: loop header
LB: loop body
LE: loop exit
PB: predicated region body
PF: predicated region fallthrough
CT: control target
= control target key end

     0   :  { %s322_s9 = smov 0   ;;  %s349_s0 = inlined_call_operand.vmem [shape: f32[128,128], index: 0, kind: input, shape index: {}]   ;;  %s350_s1 = inlined_call_operand.vmem [shape: f32[2,128], index: 1, kind: input, shape index: {}]   ;;  %s351_s2 = inlined_call_operand.vmem [shape: bf16[128,128], index: 2, kind: output, shape index: {}]  }
   0x1 LB: > { %s255_s10 = sadd.s32 4294967295, %s305_s9   ;;  %p259_p0 = scmp.ge.s32.totalorder %s305_s9, 1  ;;  %s305_s9 = sphi %s322_s9, %s12_s9  }
   0x2   : > { %p113_p1 = scmp.lt.s32.totalorder %s305_s9, 3 }
   0x4   : > { %p114_p2 = pnand %p259_p0, %p113_p1 }
   0x5   : > { %s260_s11 = sshll.u32 (!%p114_p2), %s255_s10, 3 }
   0x6   : > { %117 = sbr.rel (%p114_p2) target bundleno = 27 (0x1b), region = 28  ;;  %p136_p3 = scmp.lt.s32.totalorder (!%p114_p2), %s260_s11, 15 }
   0xb   : > { %s353_s11 = smov (!%p136_p3, %s260_s11), 15  ;;  %v297_v0 = vld [vmem:[%s350_s1] ss:$0 sm:$0xff]  ;;  %v298_v1 = vld [vmem:[%s350_s1 + $0x1] ss:$0 sm:$0xff] }
   0xc   : > { %s261_s14 = sshll.u32 %s353_s11, 3  ;;  %s263_s20 = sshll.u32 %s353_s11, 2 }
   0xd   : > { %s139_s17 = scalar_lea.vmem %s349_s0, %s261_s14  ;;  %s145_s23 = scalar_lea.vmem %s351_s2, %s263_s20 }
   0xe   : > { %v147_v2 = vld [vmem:[%s139_s17] sm:$0xff]  ;;  %v148_v3 = vld [vmem:[%s139_s17 + $0x8] sm:$0xff]  ;;  %v149_v4 = vld [vmem:[%s139_s17 + $0x10] sm:$0xff] }
   0xf   : > { %v157_v5 = vmul.f32 %v297_v0, %v147_v2  ;;  %v158_v6 = vmul.f32 %v297_v0, %v148_v3  ;;  %v150_v7 = vld [vmem:[%s139_s17 + $0x18] sm:$0xff]  ;;  %v159_v8 = vmul.f32 %v297_v0, %v149_v4  ;;  %v151_v9 = vld [vmem:[%s139_s17 + $0x20] sm:$0xff]  ;;  %v152_v10 = vld [vmem:[%s139_s17 + $0x28] sm:$0xff] }
  0x10   : > { %v160_v11 = vmul.f32 %v297_v0, %v150_v7  ;;  %v161_v12 = vmul.f32 %v297_v0, %v151_v9  ;;  %v162_v13 = vmul.f32 %v297_v0, %v152_v10  ;;  %v153_v14 = vld [vmem:[%s139_s17 + $0x30] sm:$0xff]  ;;  %v154_v15 = vld [vmem:[%s139_s17 + $0x38] sm:$0xff] }
  0x11   : > { %v167_v16 = vadd.f32 %v298_v1, %v157_v5  ;;  %v168_v17 = vadd.f32 %v298_v1, %v158_v6  ;;  %v169_v18 = vadd.f32 %v298_v1, %v159_v8  ;;  %v163_v19 = vmul.f32 %v297_v0, %v153_v14 }
  0x12   : > { %v170_v20 = vadd.f32 %v298_v1, %v160_v11  ;;  %v171_v21 = vadd.f32 %v298_v1, %v161_v12  ;;  %v172_v22 = vadd.f32 %v298_v1, %v162_v13  ;;  %v164_v23 = vmul.f32 %v297_v0, %v154_v15 }
  0x13   : > { %v175_v24 = vmax.f32 %v167_v16, 0.0  ;;  %v176_v25 = vmax.f32 %v168_v17, 0.0  ;;  %v177_v26 = vmax.f32 %v169_v18, 0.0  ;;  %v173_v27 = vadd.f32 %v298_v1, %v163_v19 }
  0x14   : > { %v178_v28 = vmax.f32 %v170_v20, 0.0  ;;  %v179_v29 = vmax.f32 %v171_v21, 0.0  ;;  %v180_v30 = vmax.f32 %v172_v22, 0.0  ;;  %v174_v31 = vadd.f32 %v298_v1, %v164_v23 }
  0x15   : > { %v269_v32 = vpack.c.bf16 %v176_v25, %v175_v24  ;;  %v181_v33 = vmax.f32 %v173_v27, 0.0 }
  0x16   : > { %v274_v34 = vpack.c.bf16 %v178_v28, %v177_v26  ;;  %v279_v35 = vpack.c.bf16 %v180_v30, %v179_v29  ;;  %v182_v36 = vmax.f32 %v174_v31, 0.0 }
  0x17   : > { %270 = vst [vmem:[%s145_s23] sm:$0xff] %v269_v32  }
  0x18   : > { %286 = vst [vmem:[%s145_s23 + $0x8] sm:$0xff] %v274_v34   ;;  %v284_v37 = vpack.c.bf16 %v182_v36, %v181_v33 }
  0x19   : > { %287 = vst [vmem:[%s145_s23 + $0x10] sm:$0xff] %v279_v35  }
  0x1a   : > { %288 = vst [vmem:[%s145_s23 + $0x18] sm:$0xff] %v284_v37  }
  0x1b PF: > { %s12_s9 = sadd.s32 1, %s305_s9  }
  0x1c   : > { %p9_p4 = scmp.ge.s32.totalorder %s12_s9, 4  }
  0x1e   :  { %11 = sbr.rel (!%p9_p4) target bundleno = 1 (0x1), region = 58 }

// kernel: basic_block_2d.4
= control target key start
LH: loop header
LB: loop body
LE: loop exit
PB: predicated region body
PF: predicated region fallthrough
CT: control target
= control target key end

     0   :  { %s573_s12 = smov 0   ;;  %s632_s0 = inlined_call_operand.vmem [shape: bf16[128,128], index: 0, kind: input, shape index: {}]   ;;  %s633_s1 = inlined_call_operand.vmem [shape: bf16[128,128], index: 1, kind: input, shape index: {}]   ;;  %s634_s2 = inlined_call_operand.vmem [shape: f32[128,128], index: 2, kind: output, shape index: {0}]   ;;  %s635_s3 = inlined_call_operand.vmem [shape: f32[2,2,128], index: 3, kind: output, shape index: {1}]  }
   0x1 LB: > { %s579_s13 = sadd.s32 4294967295, %s551_s12   ;;  %p445_p0 = scmp.ge.s32.totalorder %s551_s12, 1  ;;  %s551_s12 = sphi %s573_s12, %s14_s12  }
   0x2   : > { %p141_p1 = scmp.lt.s32.totalorder %s551_s12, 3 }
   0x4   : > { %p142_p2 = pnand %p445_p0, %p141_p1 }
   0x5   : > { %s446_s22 = sshll.u32 (!%p142_p2), %s579_s13, 3  ;;  %p181_p4 = scmp.lt.s32.totalorder (!%p142_p2), %s579_s13, 1 }
   0x6   : > { %145 = sbr.rel (%p142_p2) target bundleno = 206 (0xce), region = 28  ;;  %p170_p3 = scmp.lt.s32.totalorder (!%p142_p2), %s446_s22, 15 }
   0xb   : > { %v512_v0 = vld [vmem:[%s633_s1 + $0x38] sm:$0xff]  ;;  %v511_v1 = vld [vmem:[%s633_s1 + $0x30] sm:$0xff]  ;;  %v510_v2 = vld [vmem:[%s633_s1 + $0x28] sm:$0xff]  ;;  %s637_s22 = smov (!%p170_p3, %s446_s22), 15  ;;  %s639_s13 = smov (!%p181_p4, %s579_s13), 1 }
   0xc   : > { %281 = vmatpush.bf16.msra.mxu0 %v512_v0  ;;  %513 = vmatpush.bf16.msra.mxu1 %v512_v0  ;;  %v509_v3 = vld [vmem:[%s633_s1 + $0x20] sm:$0xff]  ;;  %v508_v4 = vld [vmem:[%s633_s1 + $0x18] sm:$0xff]  ;;  %v507_v5 = vld [vmem:[%s633_s1 + $0x10] sm:$0xff]  ;;  %s447_s29 = sshll.u32 %s637_s22, 2  ;;  %s449_s8 = sshll.u32 %s637_s22, 3 }
   0xd   : > { %514 = vmatpush.bf16.msra.mxu2 %v512_v0  ;;  %515 = vmatpush.bf16.msra.mxu3 %v512_v0  ;;  %v506_v6 = vld [vmem:[%s633_s1 + $0x8] sm:$0xff]  ;;  %v505_v7 = vld [vmem:[%s633_s1] sm:$0xff]  ;;  %s173_s7 = scalar_lea.vmem %s632_s0, %s447_s29  ;;  %s614_s11 = scalar_lea.vmem %s634_s2, %s449_s8 }
   0xe   : > { %v501_v8 = vld [vmem:[%s173_s7] sm:$0xff]  ;;  %v502_v9 = vld [vmem:[%s173_s7 + $0x8] sm:$0xff]  ;;  %v503_v10 = vld [vmem:[%s173_s7 + $0x10] sm:$0xff]  ;;  %s450_s14 = sshll.u32 %s639_s13, 1 }
   0xf   : > { %v504_v11 = vld [vmem:[%s173_s7 + $0x18] sm:$0xff]  ;;  %s184_s17 = scalar_lea.vmem %s635_s3, %s450_s14 }
  0x10   : > { %282 = vmatpush.bf16.msra.mxu0 %v511_v1  ;;  %516 = vmatpush.bf16.msra.mxu1 %v511_v1 }
  0x11   : > { %517 = vmatpush.bf16.msra.mxu2 %v511_v1  ;;  %518 = vmatpush.bf16.msra.mxu3 %v511_v1 }
  0x14   : > { %283 = vmatpush.bf16.msra.mxu0 %v510_v2  ;;  %519 = vmatpush.bf16.msra.mxu1 %v510_v2 }
  0x15   : > { %520 = vmatpush.bf16.msra.mxu2 %v510_v2  ;;  %521 = vmatpush.bf16.msra.mxu3 %v510_v2 }
  0x18   : > { %284 = vmatpush.bf16.msra.mxu0 %v509_v3  ;;  %522 = vmatpush.bf16.msra.mxu1 %v509_v3 }
  0x19   : > { %523 = vmatpush.bf16.msra.mxu2 %v509_v3  ;;  %524 = vmatpush.bf16.msra.mxu3 %v509_v3 }
  0x1c   : > { %285 = vmatpush.bf16.msra.mxu0 %v508_v4  ;;  %525 = vmatpush.bf16.msra.mxu1 %v508_v4 }
  0x1d   : > { %526 = vmatpush.bf16.msra.mxu2 %v508_v4  ;;  %527 = vmatpush.bf16.msra.mxu3 %v508_v4 }
  0x20   : > { %286 = vmatpush.bf16.msra.mxu0 %v507_v5  ;;  %528 = vmatpush.bf16.msra.mxu1 %v507_v5 }
  0x21   : > { %529 = vmatpush.bf16.msra.mxu2 %v507_v5  ;;  %530 = vmatpush.bf16.msra.mxu3 %v507_v5 }
  0x24   : > { %287 = vmatpush.bf16.msra.mxu0 %v506_v6  ;;  %531 = vmatpush.bf16.msra.mxu1 %v506_v6 }
  0x25   : > { %532 = vmatpush.bf16.msra.mxu2 %v506_v6  ;;  %533 = vmatpush.bf16.msra.mxu3 %v506_v6 }
  0x28   : > { %288 = vmatpush.bf16.msra.mxu0 %v505_v7  ;;  %534 = vmatpush.bf16.msra.mxu1 %v505_v7 }
  0x29   : > { %535 = vmatpush.bf16.msra.mxu2 %v505_v7  ;;  %536 = vmatpush.bf16.msra.mxu3 %v505_v7 }
  0x2b   : > { %289 = vmatmul.bf16.vlgmr.msra.gmra.mxu0 %v501_v8  ;;  %294 = vmatmul.bf16.vlgmr.msra.gmra.mxu1 %v502_v9 }
  0x2c   : > { %299 = vmatmul.bf16.vlgmr.msra.gmra.mxu2 %v503_v10  ;;  %304 = vmatmul.bf16.vlgmr.msra.gmra.mxu3 %v504_v11 }
  0xa8   : > { %v290_v12 = vpop.f32.mrf.mxu0  ;;  %v295_v13 = vpop.f32.mrf.mxu1 }
  0xa9   : > { %310 = vst [vmem:[%s614_s11] sm:$0xff] %v290_v12  ;;  %v332_v18 = vmul.f32 %v290_v12, %v290_v12  ;;  %v334_v21 = vmul.f32 %v295_v13, %v295_v13 }
  0xaa   : > { %312 = vst [vmem:[%s614_s11 + $0x10] sm:$0xff] %v295_v13 }
  0xaf   : > { %v300_v14 = vpop.f32.mrf.mxu2  ;;  %v305_v15 = vpop.f32.mrf.mxu3 }
  0xb0   : > { %314 = vst [vmem:[%s614_s11 + $0x20] sm:$0xff] %v300_v14  ;;  %v292_v16 = vpop.f32.mrf.mxu0  ;;  %v297_v17 = vpop.f32.mrf.mxu1  ;;  %v336_v27 = vmul.f32 %v300_v14, %v300_v14  ;;  %v338_v35 = vmul.f32 %v305_v15, %v305_v15 }
  0xb1   : > { %316 = vst [vmem:[%s614_s11 + $0x30] sm:$0xff] %v305_v15  ;;  %v318_v19 = vadd.f32 %v292_v16, %v290_v12  ;;  %v333_v20 = vmul.f32 %v292_v16, %v292_v16  ;;  %v335_v25 = vmul.f32 %v297_v17, %v297_v17 }
  0xb2   : > { %311 = vst [vmem:[%s614_s11 + $0x8] sm:$0xff] %v292_v16 }
  0xb3   : > { %v340_v22 = vadd.f32 %v333_v20, %v332_v18  ;;  %313 = vst [vmem:[%s614_s11 + $0x18] sm:$0xff] %v297_v17  ;;  %v319_v23 = vadd.f32 %v318_v19, %v295_v13 }
  0xb5   : > { %v320_v24 = vadd.f32 %v319_v23, %v297_v17  ;;  %v341_v26 = vadd.f32 %v340_v22, %v334_v21 }
  0xb7   : > { %v342_v28 = vadd.f32 %v341_v26, %v335_v25  ;;  %v302_v29 = vpop.f32.mrf.mxu2  ;;  %v321_v30 = vadd.f32 %v320_v24, %v300_v14  ;;  %v307_v31 = vpop.f32.mrf.mxu3 }
  0xb8   : > { %315 = vst [vmem:[%s614_s11 + $0x28] sm:$0xff] %v302_v29  ;;  %v337_v33 = vmul.f32 %v302_v29, %v302_v29  ;;  %v339_v39 = vmul.f32 %v307_v31, %v307_v31 }
  0xb9   : > { %v322_v32 = vadd.f32 %v321_v30, %v302_v29  ;;  %v343_v34 = vadd.f32 %v342_v28, %v336_v27  ;;  %317 = vst [vmem:[%s614_s11 + $0x38] sm:$0xff] %v307_v31 }
  0xbb   : > { %v344_v36 = vadd.f32 %v343_v34, %v337_v33  ;;  %v323_v37 = vadd.f32 %v322_v32, %v305_v15 }
  0xbd   : > { %v324_v38 = vadd.f32 %v323_v37, %v307_v31  ;;  %v345_v40 = vadd.f32 %v344_v36, %v338_v35 }
  0xbf   : > { %v325_v41 = vrot.slane %v324_v38, 4  ;;  %v346_v42 = vadd.f32 %v345_v40, %v339_v39 }
  0xc1   : > { %v326_v43 = vadd.f32 %v325_v41, %v324_v38  ;;  %v347_v44 = vrot.slane %v346_v42, 4 }
  0xc3   : > { %v327_v45 = vrot.slane %v326_v43, 2  ;;  %v348_v46 = vadd.f32 %v347_v44, %v346_v42 }
  0xc5   : > { %v328_v47 = vadd.f32 %v327_v45, %v326_v43  ;;  %v349_v48 = vrot.slane %v348_v46, 2 }
  0xc7   : > { %v329_v49 = vrot.slane %v328_v47, 1  ;;  %v350_v50 = vadd.f32 %v349_v48, %v348_v46 }
  0xc9   : > { %v330_v51 = vadd.f32 %v329_v49, %v328_v47  ;;  %v351_v52 = vrot.slane %v350_v50, 1 }
  0xcb   : > { %331 = vst [vmem:[%s184_s17] sm:$0x1] %v330_v51  ;;  %v352_v53 = vadd.f32 %v351_v52, %v350_v50 }
  0xcd   : > { %353 = vst [vmem:[%s184_s17 + $0x1] sm:$0x1] %v352_v53 }
  0xce PF: > { %s14_s12 = sadd.s32 1, %s551_s12  }
  0xcf   : > { %p11_p5 = scmp.ge.s32.totalorder %s14_s12, 4  }
  0xd1   :  { %13 = sbr.rel (!%p11_p5) target bundleno = 1 (0x1), region = 70 }

// kernel: basic_block_2d.7
= control target key start
LH: loop header
LB: loop body
LE: loop exit
PB: predicated region body
PF: predicated region fallthrough
CT: control target
= control target key end

     0   :  { %s429_s15 = smov 0   ;;  %s516_s0 = inlined_call_operand.vmem [shape: f32[128,128], index: 0, kind: input, shape index: {}]   ;;  %s517_s1 = inlined_call_operand.vmem [shape: f32[2,128], index: 1, kind: input, shape index: {}]   ;;  %s518_s2 = inlined_call_operand.vmem [shape: f32[128,128], index: 2, kind: input, shape index: {}]   ;;  %s519_s3 = inlined_call_operand.vmem [shape: f32[2,128], index: 3, kind: input, shape index: {}]   ;;  %s520_s4 = inlined_call_operand.vmem [shape: f32[128,128], index: 4, kind: output, shape index: {}]  }
   0x1 LB: > { %s371_s16 = sadd.s32 4294967295, %s402_s15   ;;  %p375_p0 = scmp.ge.s32.totalorder %s402_s15, 1  ;;  %s402_s15 = sphi %s429_s15, %s14_s15  }
   0x2   : > { %p174_p1 = scmp.lt.s32.totalorder %s402_s15, 3 }
   0x4   : > { %p175_p2 = pnand %p375_p0, %p174_p1 }
   0x5   : > { %s376_s17 = sshll.u32 (!%p175_p2), %s371_s16, 3 }
   0x6   : > { %178 = sbr.rel (%p175_p2) target bundleno = 33 (0x21), region = 36  ;;  %p206_p3 = scmp.lt.s32.totalorder (!%p175_p2), %s376_s17, 15 }
   0xb   : > { %s522_s17 = smov (!%p206_p3, %s376_s17), 15  ;;  %v392_v0 = vld [vmem:[%s517_s1] ss:$0 sm:$0xff]  ;;  %v460_v2 = vld [vmem:[%s517_s1 + $0x1] ss:$0 sm:$0xff] }
   0xc   : > { %v394_v1 = vld [vmem:[%s519_s3] ss:$0 sm:$0xff]  ;;  %s443_s22 = sshll.u32 %s522_s17, 3  ;;  %v465_v3 = vld [vmem:[%s519_s3 + $0x1] ss:$0 sm:$0xff] }
   0xd   : > { %s449_s25 = scalar_lea.vmem %s516_s0, %s443_s22  ;;  %s455_s28 = scalar_lea.vmem %s518_s2, %s443_s22 }
   0xe   : > { %v223_v4 = vld [vmem:[%s449_s25] sm:$0xff]  ;;  %v224_v6 = vld [vmem:[%s449_s25 + $0x8] sm:$0xff]  ;;  %v225_v11 = vld [vmem:[%s449_s25 + $0x10] sm:$0xff]  ;;  %s490_s9 = scalar_lea.vmem %s520_s4, %s443_s22 }
   0xf   : > { %v251_v5 = vld [vmem:[%s455_s28] sm:$0xff]  ;;  %v233_v7 = vmul.f32 %v392_v0, %v223_v4  ;;  %v234_v9 = vmul.f32 %v392_v0, %v224_v6  ;;  %v252_v10 = vld [vmem:[%s455_s28 + $0x8] sm:$0xff]  ;;  %v253_v12 = vld [vmem:[%s455_s28 + $0x10] sm:$0xff]  ;;  %v235_v14 = vmul.f32 %v392_v0, %v225_v11 }
  0x10   : > { %v261_v8 = vmul.f32 %v394_v1, %v251_v5  ;;  %v262_v13 = vmul.f32 %v394_v1, %v252_v10  ;;  %v263_v15 = vmul.f32 %v394_v1, %v253_v12  ;;  %v226_v16 = vld [vmem:[%s449_s25 + $0x18] sm:$0xff]  ;;  %v227_v18 = vld [vmem:[%s449_s25 + $0x20] sm:$0xff]  ;;  %v228_v24 = vld [vmem:[%s449_s25 + $0x28] sm:$0xff] }
  0x11   : > { %v254_v17 = vld [vmem:[%s455_s28 + $0x18] sm:$0xff]  ;;  %v243_v19 = vadd.f32 %v460_v2, %v233_v7  ;;  %v244_v21 = vadd.f32 %v460_v2, %v234_v9  ;;  %v236_v22 = vmul.f32 %v392_v0, %v226_v16  ;;  %v255_v23 = vld [vmem:[%s455_s28 + $0x20] sm:$0xff]  ;;  %v245_v26 = vadd.f32 %v460_v2, %v235_v14  ;;  %v256_v29 = vld [vmem:[%s455_s28 + $0x28] sm:$0xff] }
  0x12   : > { %v271_v20 = vadd.f32 %v465_v3, %v261_v8  ;;  %v272_v25 = vadd.f32 %v465_v3, %v262_v13  ;;  %v273_v27 = vadd.f32 %v465_v3, %v263_v15  ;;  %v264_v28 = vmul.f32 %v394_v1, %v254_v17  ;;  %v229_v38 = vld [vmem:[%s449_s25 + $0x30] sm:$0xff]  ;;  %v230_v44 = vld [vmem:[%s449_s25 + $0x38] sm:$0xff] }
  0x13   : > { %v246_v31 = vadd.f32 %v460_v2, %v236_v22  ;;  %v237_v32 = vmul.f32 %v392_v0, %v227_v18  ;;  %v265_v33 = vmul.f32 %v394_v1, %v255_v23  ;;  %v238_v37 = vmul.f32 %v392_v0, %v228_v24  ;;  %v257_v39 = vld [vmem:[%s455_s28 + $0x30] sm:$0xff]  ;;  %v258_v45 = vld [vmem:[%s455_s28 + $0x38] sm:$0xff] }
  0x14   : > { %v279_v30 = vadd.f32 %v271_v20, %v243_v19  ;;  %v280_v34 = vadd.f32 %v272_v25, %v244_v21  ;;  %v281_v35 = vadd.f32 %v273_v27, %v245_v26  ;;  %v274_v36 = vadd.f32 %v465_v3, %v264_v28 }
  0x15   : > { %v247_v41 = vadd.f32 %v460_v2, %v237_v32  ;;  %v275_v42 = vadd.f32 %v465_v3, %v265_v33  ;;  %v266_v43 = vmul.f32 %v394_v1, %v256_v29  ;;  %v248_v49 = vadd.f32 %v460_v2, %v238_v37 }
  0x16   : > { %v287_v40 = vmax.f32 %v279_v30, 0.0  ;;  %v288_v46 = vmax.f32 %v280_v34, 0.0  ;;  %v289_v47 = vmax.f32 %v281_v35, 0.0  ;;  %v282_v48 = vadd.f32 %v274_v36, %v246_v31 }
  0x17   : > { %v283_v50 = vadd.f32 %v275_v42, %v247_v41  ;;  %v276_v51 = vadd.f32 %v465_v3, %v266_v43  ;;  %v239_v52 = vmul.f32 %v392_v0, %v229_v38  ;;  %v267_v53 = vmul.f32 %v394_v1, %v257_v39 }
  0x18   : > { %295 = vst [vmem:[%s490_s9] sm:$0xff] %v287_v40  ;;  %v290_v54 = vmax.f32 %v282_v48, 0.0  ;;  %v240_v55 = vmul.f32 %v392_v0, %v230_v44  ;;  %v268_v56 = vmul.f32 %v394_v1, %v258_v45 }
  0x19   : > { %296 = vst [vmem:[%s490_s9 + $0x8] sm:$0xff] %v288_v46  ;;  %v291_v57 = vmax.f32 %v283_v50, 0.0  ;;  %v284_v58 = vadd.f32 %v276_v51, %v248_v49  ;;  %v249_v59 = vadd.f32 %v460_v2, %v239_v52  ;;  %v277_v60 = vadd.f32 %v465_v3, %v267_v53 }
  0x1a   : > { %297 = vst [vmem:[%s490_s9 + $0x10] sm:$0xff] %v289_v47  ;;  %v250_v61 = vadd.f32 %v460_v2, %v240_v55  ;;  %v278_v62 = vadd.f32 %v465_v3, %v268_v56 }
  0x1b   : > { %298 = vst [vmem:[%s490_s9 + $0x18] sm:$0xff] %v290_v54  ;;  %v292_v63 = vmax.f32 %v284_v58, 0.0  ;;  %v285_v4 = vadd.f32 %v277_v60, %v249_v59 }
  0x1c   : > { %299 = vst [vmem:[%s490_s9 + $0x20] sm:$0xff] %v291_v57  ;;  %v286_v5 = vadd.f32 %v278_v62, %v250_v61 }
  0x1d   : > { %300 = vst [vmem:[%s490_s9 + $0x28] sm:$0xff] %v292_v63  ;;  %v293_v0 = vmax.f32 %v285_v4, 0.0 }
  0x1e   : > { %v294_v1 = vmax.f32 %v286_v5, 0.0 }
  0x1f   : > { %301 = vst [vmem:[%s490_s9 + $0x30] sm:$0xff] %v293_v0 }
  0x20   : > { %302 = vst [vmem:[%s490_s9 + $0x38] sm:$0xff] %v294_v1 }
  0x21 PF: > { %s14_s15 = sadd.s32 1, %s402_s15  }
  0x22   : > { %p11_p4 = scmp.ge.s32.totalorder %s14_s15, 4  }
  0x24   :  { %13 = sbr.rel (!%p11_p4) target bundleno = 1 (0x1), region = 69 }

// kernel: basic_block_2d.6
= control target key start
LH: loop header
LB: loop body
LE: loop exit
PB: predicated region body
PF: predicated region fallthrough
CT: control target
= control target key end

     0   :  { %s2469_s24 = smov 0   ;;  %s2881_s0 = inlined_call_operand.vmem [shape: bf16[128,1152], index: 0, kind: input, shape index: {}]   ;;  %s2882_s1 = inlined_call_operand.vmem [shape: bf16[128,128], index: 1, kind: input, shape index: {}]   ;;  %s2883_s2 = inlined_call_operand.vmem [shape: bf16[1152,128], index: 2, kind: input, shape index: {}]   ;;  %s2884_s3 = inlined_call_operand.vmem [shape: bf16[128,128], index: 3, kind: input, shape index: {}]   ;;  %s2885_s4 = inlined_call_operand.vmem [shape: f32[128,128], index: 4, kind: output, shape index: {0}]   ;;  %s2886_s5 = inlined_call_operand.vmem [shape: f32[128,128], index: 5, kind: output, shape index: {1}]   ;;  %s2887_s6 = inlined_call_operand.vmem [shape: f32[2,2,128], index: 6, kind: output, shape index: {2}]   ;;  %s2888_s7 = inlined_call_operand.vmem [shape: f32[2,2,128], index: 7, kind: output, shape index: {3}]  }
   0x1 LB: > { %s2475_s25 = sadd.s32 4294967295, %s2427_s24   ;;  %p1783_p0 = scmp.ge.s32.totalorder %s2427_s24, 1  ;;  %s2427_s24 = sphi %s2469_s24, %s18_s24  }
   0x2   : > { %p257_p1 = scmp.lt.s32.totalorder %s2427_s24, 3 }
   0x4   : > { %p258_p2 = pnand %p1783_p0, %p257_p1 }
   0x5   : > { %s1784_s15 = sshll.u32 (!%p258_p2), %s2475_s25, 3  ;;  %p333_p4 = scmp.lt.s32.totalorder (!%p258_p2), %s2475_s25, 1 }
   0x6   : > { %261 = sbr.rel (%p258_p2) target bundleno = 351 (0x15f), region = 36  ;;  %p309_p3 = scmp.lt.s32.totalorder (!%p258_p2), %s1784_s15, 15 }
   0xb   : > { %v2319_v0 = vld [vmem:[%s2883_s2 + $0x38] sm:$0xff]  ;;  %v2318_v2 = vld [vmem:[%s2883_s2 + $0x30] sm:$0xff]  ;;  %v2317_v4 = vld [vmem:[%s2883_s2 + $0x28] sm:$0xff]  ;;  %s2890_s15 = smov (!%p309_p3, %s1784_s15), 15  ;;  %s2892_s25 = smov (!%p333_p4, %s2475_s25), 1 }
   0xc   : > { %v2327_v1 = vld [vmem:[%s2883_s2 + $0x78] sm:$0xff]  ;;  %2396 = vmatpush.bf16.msra.mxu2 %v2319_v0  ;;  %v2326_v3 = vld [vmem:[%s2883_s2 + $0x70] sm:$0xff]  ;;  %1141 = vmatpush.bf16.msra.mxu0 %v2319_v0  ;;  %v2325_v5 = vld [vmem:[%s2883_s2 + $0x68] sm:$0xff]  ;;  %s2412_s30 = smul.u32 36, %s2890_s15  ;;  %s1787_s13 = sshll.u32 %s2890_s15, 2 }
   0xd   : > { %1170 = vmatpush.bf16.msra.mxu1 %v2327_v1  ;;  %2404 = vmatpush.bf16.msra.mxu3 %v2327_v1  ;;  %v2316_v6 = vld [vmem:[%s2883_s2 + $0x20] sm:$0xff]  ;;  %v2315_v8 = vld [vmem:[%s2883_s2 + $0x18] sm:$0xff]  ;;  %v2314_v10 = vld [vmem:[%s2883_s2 + $0x10] sm:$0xff]  ;;  %s2782_s18 = scalar_lea.vmem %s2882_s1, %s1787_s13  ;;  %s1792_s26 = sshll.u32 %s2892_s25, 1 }
   0xe   : > { %v2324_v7 = vld [vmem:[%s2883_s2 + $0x60] sm:$0xff]  ;;  %v2323_v9 = vld [vmem:[%s2883_s2 + $0x58] sm:$0xff]  ;;  %v2322_v11 = vld [vmem:[%s2883_s2 + $0x50] sm:$0xff]  ;;  %s2528_s14 = scalar_lea.vmem %s2881_s0, %s2412_s30  ;;  %s340_s29 = scalar_lea.vmem %s2888_s7, %s1792_s26 }
   0xf   : > { %v2313_v12 = vld [vmem:[%s2883_s2 + $0x8] sm:$0xff]  ;;  %v2312_v14 = vld [vmem:[%s2883_s2] sm:$0xff]  ;;  %v1868_v16 = vld [vmem:[%s2528_s14 + $0x90] sm:$0xf]  ;;  %s336_s8 = scalar_lea.vmem %s2887_s6, %s1792_s26 }
  0x10   : > { %2397 = vmatpush.bf16.msra.mxu2 %v2318_v2  ;;  %1142 = vmatpush.bf16.msra.mxu0 %v2318_v2  ;;  %v2321_v13 = vld [vmem:[%s2883_s2 + $0x48] sm:$0xff]  ;;  %v2320_v15 = vld [vmem:[%s2883_s2 + $0x40] sm:$0xff]  ;;  %v2298_v17 = vld [vmem:[%s2528_s14 + $0xb0] sm:$0xf0] }
  0x11   : > { %1171 = vmatpush.bf16.msra.mxu1 %v2326_v3  ;;  %2405 = vmatpush.bf16.msra.mxu3 %v2326_v3  ;;  %v2276_v18 = vld [vmem:[%s2528_s14 + $0x4] sm:$0xf]  ;;  %v1798_v19 = vld [vmem:[%s2528_s14 + $0x24] sm:$0xf0]  ;;  %v2294_v20 = vld [vmem:[%s2528_s14 + $0x94] sm:$0xf]  ;;  %v1869_v26 = vor.u32 %v2298_v17, %v1868_v16 }
  0x12   : > { %v1870_v21 = vld [vmem:[%s2528_s14 + $0xb4] sm:$0xf0]  ;;  %v1796_v24 = vld [vmem:[%s2528_s14] sm:$0xf]  ;;  %v2280_v25 = vld [vmem:[%s2528_s14 + $0x20] sm:$0xf0]  ;;  %v1801_v27 = vor.u32 %v2276_v18, %v1798_v19 }
  0x13   : > { %v2335_v22 = vld [vmem:[%s2883_s2 + $0xb8] sm:$0xff]  ;;  %v1873_v28 = vor.u32 %v2294_v20, %v1870_v21  ;;  %v1797_v30 = vor.u32 %v2280_v25, %v1796_v24  ;;  %v2334_v32 = vld [vmem:[%s2883_s2 + $0xb0] sm:$0xff]  ;;  %v2333_v36 = vld [vmem:[%s2883_s2 + $0xa8] sm:$0xff] }
  0x14   : > { %2398 = vmatpush.bf16.msra.mxu2 %v2317_v4  ;;  %1143 = vmatpush.bf16.msra.mxu0 %v2317_v4  ;;  %v2343_v23 = vld [vmem:[%s2883_s2 + $0xf8] sm:$0xff]  ;;  %v2342_v33 = vld [vmem:[%s2883_s2 + $0xf0] sm:$0xff]  ;;  %v2341_v37 = vld [vmem:[%s2883_s2 + $0xe8] sm:$0xff] }
  0x15   : > { %1172 = vmatpush.bf16.msra.mxu1 %v2325_v5  ;;  %2406 = vmatpush.bf16.msra.mxu3 %v2325_v5  ;;  %v2359_v29 = vld [vmem:[%s2883_s2 + $0x178] sm:$0xff]  ;;  %v2358_v34 = vld [vmem:[%s2883_s2 + $0x170] sm:$0xff]  ;;  %v2357_v38 = vld [vmem:[%s2883_s2 + $0x168] sm:$0xff] }
  0x16   : > { %v2351_v31 = vld [vmem:[%s2883_s2 + $0x138] sm:$0xff]  ;;  %v2350_v35 = vld [vmem:[%s2883_s2 + $0x130] sm:$0xff]  ;;  %v2349_v39 = vld [vmem:[%s2883_s2 + $0x128] sm:$0xff] }
  0x17   : > { %v2332_v40 = vld [vmem:[%s2883_s2 + $0xa0] sm:$0xff]  ;;  %v1904_v43 = vld [vmem:[%s2528_s14 + $0xd8] sm:$0xf]  ;;  %v2307_v44 = vld [vmem:[%s2528_s14 + $0xf8] sm:$0xf0] }
  0x18   : > { %2399 = vmatpush.bf16.msra.mxu2 %v2316_v6  ;;  %1144 = vmatpush.bf16.msra.mxu0 %v2316_v6  ;;  %v2340_v41 = vld [vmem:[%s2883_s2 + $0xe0] sm:$0xff]  ;;  %v2285_v45 = vld [vmem:[%s2528_s14 + $0x4c] sm:$0xf]  ;;  %v1834_v46 = vld [vmem:[%s2528_s14 + $0x6c] sm:$0xf0]  ;;  %v1905_v53 = vor.u32 %v2307_v44, %v1904_v43 }
  0x19   : > { %1173 = vmatpush.bf16.msra.mxu1 %v2324_v7  ;;  %2407 = vmatpush.bf16.msra.mxu3 %v2324_v7  ;;  %v2356_v42 = vld [vmem:[%s2883_s2 + $0x160] sm:$0xff]  ;;  %v2303_v48 = vld [vmem:[%s2528_s14 + $0xdc] sm:$0xf]  ;;  %v1832_v51 = vld [vmem:[%s2528_s14 + $0x48] sm:$0xf]  ;;  %v1837_v54 = vor.u32 %v2285_v45, %v1834_v46 }
  0x1a   : > { %v2348_v47 = vld [vmem:[%s2883_s2 + $0x120] sm:$0xff]  ;;  %v2331_v50 = vld [vmem:[%s2883_s2 + $0x98] sm:$0xff]  ;;  %v2289_v52 = vld [vmem:[%s2528_s14 + $0x68] sm:$0xf0] }
  0x1b   : > { %v1906_v49 = vld [vmem:[%s2528_s14 + $0xfc] sm:$0xf0]  ;;  %v2355_v56 = vld [vmem:[%s2883_s2 + $0x158] sm:$0xff]  ;;  %v1833_v58 = vor.u32 %v2289_v52, %v1832_v51  ;;  %v2330_v60 = vld [vmem:[%s2883_s2 + $0x90] sm:$0xff] }
  0x1c   : > { %2400 = vmatpush.bf16.msra.mxu2 %v2315_v8  ;;  %1145 = vmatpush.bf16.msra.mxu0 %v2315_v8  ;;  %v1909_v55 = vor.u32 %v2303_v48, %v1906_v49  ;;  %v2339_v57 = vld [vmem:[%s2883_s2 + $0xd8] sm:$0xff]  ;;  %v2354_v61 = vld [vmem:[%s2883_s2 + $0x150] sm:$0xff]  ;;  %v2329_v0 = vld [vmem:[%s2883_s2 + $0x88] sm:$0xff] }
  0x1d   : > { %1174 = vmatpush.bf16.msra.mxu1 %v2323_v9  ;;  %2408 = vmatpush.bf16.msra.mxu3 %v2323_v9  ;;  %v2347_v59 = vld [vmem:[%s2883_s2 + $0x118] sm:$0xff]  ;;  %v2338_v62 = vld [vmem:[%s2883_s2 + $0xd0] sm:$0xff]  ;;  %v2353_v1 = vld [vmem:[%s2883_s2 + $0x148] sm:$0xff] }
  0x1e   : > { %v2346_v63 = vld [vmem:[%s2883_s2 + $0x110] sm:$0xff]  ;;  %v2337_v2 = vld [vmem:[%s2883_s2 + $0xc8] sm:$0xff]  ;;  %v2328_v4 = vld [vmem:[%s2883_s2 + $0x80] sm:$0xff] }
  0x1f   : > { %v2345_v3 = vld [vmem:[%s2883_s2 + $0x108] sm:$0xff]  ;;  %v2336_v5 = vld [vmem:[%s2883_s2 + $0xc0] sm:$0xff]  ;;  %v2367_v8 = vld [vmem:[%s2883_s2 + $0x1b8] sm:$0xff] }
  0x20   : > { %2401 = vmatpush.bf16.msra.mxu2 %v2314_v10  ;;  %1146 = vmatpush.bf16.msra.mxu0 %v2314_v10  ;;  %v2352_v6 = vld [vmem:[%s2883_s2 + $0x140] sm:$0xff]  ;;  %v1804_v7 = vld [vmem:[%s2528_s14 + $0x8] sm:$0xf]  ;;  %v2281_v10 = vld [vmem:[%s2528_s14 + $0x28] sm:$0xf0] }
  0x21   : > { %1175 = vmatpush.bf16.msra.mxu1 %v2322_v11  ;;  %2409 = vmatpush.bf16.msra.mxu3 %v2322_v11  ;;  %v2344_v9 = vld [vmem:[%s2883_s2 + $0x100] sm:$0xff]  ;;  %v2278_v11 = vld [vmem:[%s2528_s14 + $0x14] sm:$0xf]  ;;  %v1812_v16 = vld [vmem:[%s2528_s14 + $0x10] sm:$0xf]  ;;  %v1805_v19 = vor.u32 %v2281_v10, %v1804_v7 }
  0x22   : > { %v2282_v17 = vld [vmem:[%s2528_s14 + $0x30] sm:$0xf0]  ;;  %v2375_v18 = vld [vmem:[%s2883_s2 + $0x1f8] sm:$0xff]  ;;  %v2380_v46 = vld [vmem:[%s2883_s2 + $0x220] sm:$0xff] }
  0x23   : > { %v2394_v24 = vld [vmem:[%s2884_s3 + $0x30] sm:$0xff]  ;;  %v2391_v43 = vld [vmem:[%s2884_s3 + $0x18] sm:$0xff]  ;;  %v2376_v7 = vld [vmem:[%s2883_s2 + $0x200] sm:$0xff] }
  0x24   : > { %2402 = vmatpush.bf16.msra.mxu2 %v2313_v12  ;;  %1147 = vmatpush.bf16.msra.mxu0 %v2313_v12  ;;  %v1814_v12 = vld [vmem:[%s2528_s14 + $0x34] sm:$0xf0]  ;;  %v2374_v25 = vld [vmem:[%s2883_s2 + $0x1f0] sm:$0xff]  ;;  %v2291_v44 = vld [vmem:[%s2528_s14 + $0x78] sm:$0xf0] }
  0x25   : > { %1176 = vmatpush.bf16.msra.mxu1 %v2321_v13  ;;  %2410 = vmatpush.bf16.msra.mxu3 %v2321_v13  ;;  %v2277_v13 = vld [vmem:[%s2528_s14 + $0xc] sm:$0xf]  ;;  %v1817_v20 = vor.u32 %v2278_v11, %v1814_v12  ;;  %v2371_v45 = vld [vmem:[%s2883_s2 + $0x1d8] sm:$0xff]  ;;  %v2370_v52 = vld [vmem:[%s2883_s2 + $0x1d0] sm:$0xff] }
  0x26   : > { %v1912_v12 = vld [vmem:[%s2528_s14 + $0xe0] sm:$0xf] }
  0x28   : > { %2403 = vmatpush.bf16.msra.mxu2 %v2312_v14  ;;  %1148 = vmatpush.bf16.msra.mxu0 %v2312_v14  ;;  %v1806_v14 = vld [vmem:[%s2528_s14 + $0x2c] sm:$0xf0] }
  0x29   : > { %1177 = vmatpush.bf16.msra.mxu1 %v2320_v15  ;;  %2411 = vmatpush.bf16.msra.mxu3 %v2320_v15  ;;  %v2395_v15 = vld [vmem:[%s2884_s3 + $0x38] sm:$0xff]  ;;  %v1809_v21 = vor.u32 %v2277_v13, %v1806_v14  ;;  %v2308_v13 = vld [vmem:[%s2528_s14 + $0x100] sm:$0xf0]  ;;  %v2305_v14 = vld [vmem:[%s2528_s14 + $0xec] sm:$0xf] }
  0x2b   : > { %1159 = vmatmul.bf16.vlgmr.msra.gmra.mxu2 %v1869_v26  ;;  %1149 = vmatmul.bf16.vlgmr.msra.gmra.mxu0 %v1797_v30  ;;  %v2383_v26 = vld [vmem:[%s2883_s2 + $0x238] sm:$0xff]  ;;  %v2382_v30 = vld [vmem:[%s2883_s2 + $0x230] sm:$0xff] }
  0x2c   : > { %1199 = vmatpush.bf16.msrb.mxu2 %v2335_v22  ;;  %1178 = vmatmul.bf16.vlgmr.msra.gmra.mxu1 %v1801_v27  ;;  %v2366_v22 = vld [vmem:[%s2883_s2 + $0x1b0] sm:$0xff]  ;;  %v2365_v27 = vld [vmem:[%s2883_s2 + $0x1a8] sm:$0xff] }
  0x2d   : > { %1228 = vmatpush.bf16.msrb.mxu3 %v2343_v23  ;;  %1286 = vmatpush.bf16.msrb.mxu1 %v2359_v29  ;;  %v1813_v23 = vor.u32 %v2282_v17, %v1812_v16  ;;  %v2373_v29 = vld [vmem:[%s2883_s2 + $0x1e8] sm:$0xff]  ;;  %v2304_v16 = vld [vmem:[%s2528_s14 + $0xe4] sm:$0xf] }
  0x2e   : > { %1188 = vmatmul.bf16.vlgmr.msra.gmra.mxu3 %v1873_v28  ;;  %1257 = vmatpush.bf16.msrb.mxu0 %v2351_v31  ;;  %v2393_v28 = vld [vmem:[%s2884_s3 + $0x28] sm:$0xff]  ;;  %v2364_v31 = vld [vmem:[%s2883_s2 + $0x1a0] sm:$0xff] }
  0x2f   : > { %v1914_v17 = vld [vmem:[%s2528_s14 + $0x104] sm:$0xf0] }
  0x30   : > { %1200 = vmatpush.bf16.msrb.mxu2 %v2334_v32  ;;  %v2392_v32 = vld [vmem:[%s2884_s3 + $0x20] sm:$0xff] }
  0x31   : > { %1229 = vmatpush.bf16.msrb.mxu3 %v2342_v33  ;;  %1287 = vmatpush.bf16.msrb.mxu1 %v2358_v34  ;;  %v2372_v33 = vld [vmem:[%s2883_s2 + $0x1e0] sm:$0xff]  ;;  %v2381_v34 = vld [vmem:[%s2883_s2 + $0x228] sm:$0xff] }
  0x32   : > { %1258 = vmatpush.bf16.msrb.mxu0 %v2350_v35  ;;  %v1840_v35 = vld [vmem:[%s2528_s14 + $0x50] sm:$0xf] }
  0x34   : > { %1201 = vmatpush.bf16.msrb.mxu2 %v2333_v36  ;;  %v2290_v36 = vld [vmem:[%s2528_s14 + $0x70] sm:$0xf0] }
  0x35   : > { %1230 = vmatpush.bf16.msrb.mxu3 %v2341_v37  ;;  %1288 = vmatpush.bf16.msrb.mxu1 %v2357_v38  ;;  %v2286_v37 = vld [vmem:[%s2528_s14 + $0x54] sm:$0xf]  ;;  %v2287_v38 = vld [vmem:[%s2528_s14 + $0x5c] sm:$0xf] }
  0x36   : > { %1259 = vmatpush.bf16.msrb.mxu0 %v2349_v39  ;;  %v1850_v39 = vld [vmem:[%s2528_s14 + $0x7c] sm:$0xf0] }
  0x37   : > { %v1853_v48 = vor.u32 %v2287_v38, %v1850_v39  ;;  %v1864_v38 = vld [vmem:[%s2528_s14 + $0x68] sm:$0xf]  ;;  %v2293_v39 = vld [vmem:[%s2528_s14 + $0x88] sm:$0xf0] }
  0x38   : > { %1202 = vmatpush.bf16.msrb.mxu2 %v2332_v40  ;;  %v2363_v40 = vld [vmem:[%s2883_s2 + $0x198] sm:$0xff] }
  0x39   : > { %1231 = vmatpush.bf16.msrb.mxu3 %v2340_v41  ;;  %1289 = vmatpush.bf16.msrb.mxu1 %v2356_v42  ;;  %v1842_v41 = vld [vmem:[%s2528_s14 + $0x74] sm:$0xf0] }
  0x3a   : > { %1260 = vmatpush.bf16.msrb.mxu0 %v2348_v47  ;;  %v1848_v42 = vld [vmem:[%s2528_s14 + $0x58] sm:$0xf]  ;;  %v1841_v47 = vor.u32 %v2290_v36, %v1840_v35  ;;  %v1845_v49 = vor.u32 %v2286_v37, %v1842_v41  ;;  %v2292_v35 = vld [vmem:[%s2528_s14 + $0x80] sm:$0xf0]  ;;  %v1858_v37 = vld [vmem:[%s2528_s14 + $0x84] sm:$0xf0] }
  0x3b   : > { %1164 = vmatmul.bf16.gmra.mxu2 %v1905_v53  ;;  %1154 = vmatmul.bf16.gmra.mxu0 %v1833_v58  ;;  %v1849_v51 = vor.u32 %v2291_v44, %v1848_v42  ;;  %v2379_v53 = vld [vmem:[%s2883_s2 + $0x218] sm:$0xff]  ;;  %v2389_v58 = vld [vmem:[%s2884_s3 + $0x8] sm:$0xff]  ;;  %v2288_v36 = vld [vmem:[%s2528_s14 + $0x64] sm:$0xf] }
  0x3c   : > { %1203 = vmatpush.bf16.msrb.mxu2 %v2331_v50  ;;  %1183 = vmatmul.bf16.gmra.mxu1 %v1837_v54  ;;  %v2362_v50 = vld [vmem:[%s2883_s2 + $0x190] sm:$0xff]  ;;  %v2361_v54 = vld [vmem:[%s2883_s2 + $0x188] sm:$0xff]  ;;  %v1861_v42 = vor.u32 %v2288_v36, %v1858_v37 }
  0x3d   : > { %1290 = vmatpush.bf16.msrb.mxu1 %v2355_v56  ;;  %1232 = vmatpush.bf16.msrb.mxu3 %v2339_v57  ;;  %v2369_v56 = vld [vmem:[%s2883_s2 + $0x1c8] sm:$0xff]  ;;  %v2378_v57 = vld [vmem:[%s2883_s2 + $0x210] sm:$0xff] }
  0x3e   : > { %1193 = vmatmul.bf16.gmra.mxu3 %v1909_v55  ;;  %1261 = vmatpush.bf16.msrb.mxu0 %v2347_v59  ;;  %v2390_v55 = vld [vmem:[%s2884_s3 + $0x10] sm:$0xff]  ;;  %v2360_v59 = vld [vmem:[%s2883_s2 + $0x180] sm:$0xff]  ;;  %v2385_v41 = vld [vmem:[%s2782_s18 + $0x8] sm:$0xff] }
  0x3f   : > { %v1892_v44 = vld [vmem:[%s2528_s14 + $0xa8] sm:$0xf] }
  0x40   : > { %1204 = vmatpush.bf16.msrb.mxu2 %v2330_v60  ;;  %v2368_v60 = vld [vmem:[%s2883_s2 + $0x1c0] sm:$0xff] }
  0x41   : > { %1291 = vmatpush.bf16.msrb.mxu1 %v2354_v61  ;;  %1233 = vmatpush.bf16.msrb.mxu3 %v2338_v62  ;;  %v2377_v61 = vld [vmem:[%s2883_s2 + $0x208] sm:$0xff]  ;;  %v1876_v62 = vld [vmem:[%s2528_s14 + $0x98] sm:$0xf] }
  0x42   : > { %1262 = vmatpush.bf16.msrb.mxu0 %v2346_v63  ;;  %v2388_v63 = vld [vmem:[%s2884_s3] sm:$0xff] }
  0x44   : > { %1205 = vmatpush.bf16.msrb.mxu2 %v2329_v0  ;;  %v2299_v0 = vld [vmem:[%s2528_s14 + $0xb8] sm:$0xf0] }
  0x45   : > { %1292 = vmatpush.bf16.msrb.mxu1 %v2353_v1  ;;  %1234 = vmatpush.bf16.msrb.mxu3 %v2337_v2  ;;  %v2296_v1 = vld [vmem:[%s2528_s14 + $0xa4] sm:$0xf]  ;;  %v1886_v2 = vld [vmem:[%s2528_s14 + $0xc4] sm:$0xf0] }
  0x46   : > { %1263 = vmatpush.bf16.msrb.mxu0 %v2345_v3  ;;  %v2295_v3 = vld [vmem:[%s2528_s14 + $0x9c] sm:$0xf] }
  0x48   : > { %1206 = vmatpush.bf16.msrb.mxu2 %v2328_v4  ;;  %v1878_v4 = vld [vmem:[%s2528_s14 + $0xbc] sm:$0xf0] }
  0x49   : > { %1293 = vmatpush.bf16.msrb.mxu1 %v2352_v6  ;;  %1235 = vmatpush.bf16.msrb.mxu3 %v2336_v5  ;;  %v1884_v5 = vld [vmem:[%s2528_s14 + $0xa0] sm:$0xf]  ;;  %v2300_v6 = vld [vmem:[%s2528_s14 + $0xc0] sm:$0xf0]  ;;  %v1881_v10 = vor.u32 %v2295_v3, %v1878_v4  ;;  %v1936_v4 = vld [vmem:[%s2528_s14 + $0xf8] sm:$0xf] }
  0x4a   : > { %1264 = vmatpush.bf16.msrb.mxu0 %v2344_v9  ;;  %v1889_v9 = vor.u32 %v2296_v1, %v1886_v2  ;;  %v1885_v11 = vor.u32 %v2300_v6, %v1884_v5  ;;  %v2306_v1 = vld [vmem:[%s2528_s14 + $0xf4] sm:$0xf]  ;;  %v1930_v2 = vld [vmem:[%s2528_s14 + $0x114] sm:$0xf0]  ;;  %v2311_v5 = vld [vmem:[%s2528_s14 + $0x118] sm:$0xf0] }
  0x4b   : > { %1207 = vmatmul.bf16.vlgmr.msrb.gmra.mxu2 %v1805_v19  ;;  %v2309_v19 = vld [vmem:[%s2528_s14 + $0x108] sm:$0xf0] }
  0x4c   : > { %1315 = vmatpush.bf16.msra.mxu2 %v2367_v8  ;;  %1294 = vmatmul.bf16.vlgmr.msrb.gmra.mxu1 %v1817_v20  ;;  %v1877_v8 = vor.u32 %v2299_v0, %v1876_v62  ;;  %v1913_v20 = vor.u32 %v2308_v13, %v1912_v12  ;;  %v2310_v0 = vld [vmem:[%s2528_s14 + $0x110] sm:$0xf0]  ;;  %v1937_v12 = vor.u32 %v2311_v5, %v1936_v4 }
  0x4d   : > { %1542 = vmatpush.bf16.msra.mxu1 %v2395_v15  ;;  %1344 = vmatpush.bf16.msra.mxu3 %v2375_v18  ;;  %v1922_v15 = vld [vmem:[%s2528_s14 + $0x10c] sm:$0xf0]  ;;  %v1920_v18 = vld [vmem:[%s2528_s14 + $0xe8] sm:$0xf] }
  0x4e   : > { %1236 = vmatmul.bf16.vlgmr.msrb.gmra.mxu3 %v1809_v21  ;;  %1265 = vmatmul.bf16.vlgmr.msrb.gmra.mxu0 %v1813_v23  ;;  %v1925_v21 = vor.u32 %v2305_v14, %v1922_v15  ;;  %v1921_v23 = vor.u32 %v2309_v19, %v1920_v18 }
  0x4f   : > { %1373 = vmatpush.bf16.msra.mxu0 %v2383_v26  ;;  %v2279_v26 = vld [vmem:[%s2528_s14 + $0x1c] sm:$0xf] }
  0x50   : > { %1316 = vmatpush.bf16.msra.mxu2 %v2366_v22  ;;  %v1917_v22 = vor.u32 %v2304_v16, %v1914_v17 }
  0x51   : > { %1543 = vmatpush.bf16.msra.mxu1 %v2394_v24  ;;  %1345 = vmatpush.bf16.msra.mxu3 %v2374_v25  ;;  %v1820_v24 = vld [vmem:[%s2528_s14 + $0x18] sm:$0xf]  ;;  %v2283_v25 = vld [vmem:[%s2528_s14 + $0x38] sm:$0xf0] }
  0x53   : > { %1374 = vmatpush.bf16.msra.mxu0 %v2382_v30  ;;  %v1821_v30 = vor.u32 %v2283_v25, %v1820_v24 }
  0x54   : > { %1317 = vmatpush.bf16.msra.mxu2 %v2365_v27  ;;  %v1822_v27 = vld [vmem:[%s2528_s14 + $0x3c] sm:$0xf0] }
  0x55   : > { %1544 = vmatpush.bf16.msra.mxu1 %v2393_v28  ;;  %1346 = vmatpush.bf16.msra.mxu3 %v2373_v29  ;;  %v1828_v28 = vld [vmem:[%s2528_s14 + $0x20] sm:$0xf]  ;;  %v2284_v29 = vld [vmem:[%s2528_s14 + $0x40] sm:$0xf0] }
  0x57   : > { %1375 = vmatpush.bf16.msra.mxu0 %v2381_v34  ;;  %v1856_v34 = vld [vmem:[%s2528_s14 + $0x60] sm:$0xf] }
  0x58   : > { %1318 = vmatpush.bf16.msra.mxu2 %v2364_v31  ;;  %v2384_v31 = vld [vmem:[%s2782_s18] sm:$0xff] }
  0x59   : > { %1545 = vmatpush.bf16.msra.mxu1 %v2392_v32  ;;  %1347 = vmatpush.bf16.msra.mxu3 %v2372_v33  ;;  %v1825_v32 = vor.u32 %v2279_v26, %v1822_v27  ;;  %v1829_v33 = vor.u32 %v2284_v29, %v1828_v28 }
  0x5b   : > { %1376 = vmatpush.bf16.msra.mxu0 %v2380_v46  ;;  %1212 = vmatmul.bf16.gmra.mxu2 %v1841_v47  ;;  %v2297_v46 = vld [vmem:[%s2528_s14 + $0xac] sm:$0xf]  ;;  %v1894_v47 = vld [vmem:[%s2528_s14 + $0xcc] sm:$0xf0] }
  0x5c   : > { %1319 = vmatpush.bf16.msra.mxu2 %v2363_v40  ;;  %1299 = vmatmul.bf16.gmra.mxu1 %v1853_v48  ;;  %v1857_v40 = vor.u32 %v2292_v35, %v1856_v34  ;;  %v1900_v48 = vld [vmem:[%s2528_s14 + $0xb0] sm:$0xf] }
  0x5d   : > { %1546 = vmatpush.bf16.msra.mxu1 %v2391_v43  ;;  %1348 = vmatpush.bf16.msra.mxu3 %v2371_v45  ;;  %v1865_v43 = vor.u32 %v2293_v39, %v1864_v38  ;;  %v2301_v45 = vld [vmem:[%s2528_s14 + $0xc8] sm:$0xf0] }
  0x5e   : > { %1241 = vmatmul.bf16.gmra.mxu3 %v1845_v49  ;;  %1270 = vmatmul.bf16.gmra.mxu0 %v1849_v51  ;;  %v2302_v49 = vld [vmem:[%s2528_s14 + $0xd0] sm:$0xf0] }
  0x5f   : > { %1377 = vmatpush.bf16.msra.mxu0 %v2379_v53  ;;  %v2386_v51 = vld [vmem:[%s2782_s18 + $0x10] sm:$0xff]  ;;  %v1897_v53 = vor.u32 %v2297_v46, %v1894_v47 }
  0x60   : > { %1320 = vmatpush.bf16.msra.mxu2 %v2362_v50  ;;  %v1893_v50 = vor.u32 %v2301_v45, %v1892_v44 }
  0x61   : > { %1349 = vmatpush.bf16.msra.mxu3 %v2370_v52  ;;  %1547 = vmatpush.bf16.msra.mxu1 %v2390_v55 }
  0x63   : > { %1378 = vmatpush.bf16.msra.mxu0 %v2378_v57 }
  0x64   : > { %1321 = vmatpush.bf16.msra.mxu2 %v2361_v54  ;;  %v1901_v54 = vor.u32 %v2302_v49, %v1900_v48 }
  0x65   : > { %1350 = vmatpush.bf16.msra.mxu3 %v2369_v56  ;;  %1548 = vmatpush.bf16.msra.mxu1 %v2389_v58 }
  0x67   : > { %1379 = vmatpush.bf16.msra.mxu0 %v2377_v61 }
  0x68   : > { %1322 = vmatpush.bf16.msra.mxu2 %v2360_v59 }
  0x69   : > { %1351 = vmatpush.bf16.msra.mxu3 %v2368_v60  ;;  %1549 = vmatpush.bf16.msra.mxu1 %v2388_v63  ;;  %v1928_v63 = vld [vmem:[%s2528_s14 + $0xf0] sm:$0xf]  ;;  %s1789_s14 = sshll.u32 %s2890_s15, 3 }
  0x6a   : > { %s2829_s21 = scalar_lea.vmem %s2886_s5, %s1789_s14  ;;  %s2841_s23 = scalar_lea.vmem %s2885_s4, %s1789_s14 }
  0x6b   : > { %1380 = vmatpush.bf16.msra.mxu0 %v2376_v7  ;;  %1217 = vmatmul.bf16.gmra.mxu2 %v1877_v8  ;;  %v1929_v7 = vor.u32 %v2310_v0, %v1928_v63  ;;  %v2387_v8 = vld [vmem:[%s2782_s18 + $0x18] sm:$0xff] }
  0x6c   : > { %1304 = vmatmul.bf16.gmra.mxu1 %v1889_v9 }
  0x6e   : > { %1246 = vmatmul.bf16.gmra.mxu3 %v1881_v10  ;;  %1275 = vmatmul.bf16.gmra.mxu0 %v1885_v11  ;;  %v1933_v11 = vor.u32 %v2306_v1, %v1930_v2 }
  0x7b   : > { %1222 = vmatmul.bf16.gmra.mxu2 %v1913_v20 }
  0x7c   : > { %1309 = vmatmul.bf16.gmra.mxu1 %v1925_v21 }
  0x7e   : > { %1251 = vmatmul.bf16.gmra.mxu3 %v1917_v22  ;;  %1280 = vmatmul.bf16.gmra.mxu0 %v1921_v23 }
  0x8b   : > { %1323 = vmatmul.bf16.vlgmr.msra.gmra.mxu2 %v1821_v30 }
  0x8c   : > { %1550 = vmatmul.bf16.vlgmr.msra.gmra.mxu1 %v2384_v31 }
  0x8e   : > { %1352 = vmatmul.bf16.vlgmr.msra.gmra.mxu3 %v1825_v32  ;;  %1381 = vmatmul.bf16.vlgmr.msra.gmra.mxu0 %v1829_v33 }
  0x9b   : > { %1328 = vmatmul.bf16.gmra.mxu2 %v1857_v40 }
  0x9c   : > { %1555 = vmatmul.bf16.gmra.mxu1 %v2385_v41 }
  0x9e   : > { %1357 = vmatmul.bf16.gmra.mxu3 %v1861_v42  ;;  %1386 = vmatmul.bf16.gmra.mxu0 %v1865_v43 }
  0xa8   : > { %v1150_v55 = vpop.f32.mrf.mxu0 }
  0xa9   : > { %v1179_v52 = vpop.f32.mrf.mxu1 }
  0xaa   : > { %v1180_v56 = vadd.f32 %v1179_v52, %v1150_v55 }
  0xab   : > { %1333 = vmatmul.bf16.gmra.mxu2 %v1893_v50 }
  0xac   : > { %1560 = vmatmul.bf16.gmra.mxu1 %v2386_v51 }
  0xae   : > { %1362 = vmatmul.bf16.gmra.mxu3 %v1897_v53  ;;  %1391 = vmatmul.bf16.gmra.mxu0 %v1901_v54  ;;  %v1160_v57 = vpop.f32.mrf.mxu2 }
  0xb0   : > { %v1152_v61 = vpop.f32.mrf.mxu0 }
  0xb1   : > { %v1189_v58 = vpop.f32.mrf.mxu3  ;;  %v1181_v60 = vpop.f32.mrf.mxu1 }
  0xb2   : > { %v2803_v59 = vadd.f32 %v1189_v58, %v1160_v57  ;;  %v1182_v62 = vadd.f32 %v1181_v60, %v1152_v61 }
  0xb6   : > { %v1162_v3 = vpop.f32.mrf.mxu2 }
  0xb8   : > { %v1155_v13 = vpop.f32.mrf.mxu0 }
  0xb9   : > { %v1191_v6 = vpop.f32.mrf.mxu3  ;;  %v1184_v10 = vpop.f32.mrf.mxu1 }
  0xba   : > { %v1192_v9 = vadd.f32 %v1191_v6, %v1162_v3  ;;  %v1185_v14 = vadd.f32 %v1184_v10, %v1155_v13 }
  0xbb   : > { %1338 = vmatmul.bf16.gmra.mxu2 %v1929_v7 }
  0xbc   : > { %1565 = vmatmul.bf16.gmra.mxu1 %v2387_v8 }
  0xbe   : > { %1367 = vmatmul.bf16.gmra.mxu3 %v1933_v11  ;;  %1396 = vmatmul.bf16.gmra.mxu0 %v1937_v12  ;;  %v1165_v15 = vpop.f32.mrf.mxu2 }
  0xc0   : > { %v1157_v19 = vpop.f32.mrf.mxu0 }
  0xc1   : > { %v1194_v16 = vpop.f32.mrf.mxu3  ;;  %v1186_v18 = vpop.f32.mrf.mxu1 }
  0xc2   : > { %v1195_v17 = vadd.f32 %v1194_v16, %v1165_v15  ;;  %v1187_v20 = vadd.f32 %v1186_v18, %v1157_v19 }
  0xc6   : > { %v1167_v21 = vpop.f32.mrf.mxu2 }
  0xc9   : > { %v1196_v22 = vpop.f32.mrf.mxu3  ;;  %v1295_v24 = vpop.f32.mrf.mxu1 }
  0xca   : > { %v1197_v23 = vadd.f32 %v1196_v22, %v1167_v21 }
  0xcb   : > { %v1266_v25 = vpop.f32.mrf.mxu0 }
  0xce   : > { %v1208_v26 = vpop.f32.mrf.mxu2 }
  0xcf   : > { %v1209_v27 = vadd.f32 %v1208_v26, %v1180_v56 }
  0xd1   : > { %v1237_v28 = vpop.f32.mrf.mxu3  ;;  %v1297_v29 = vpop.f32.mrf.mxu1 }
  0xd2   : > { %v1238_v30 = vadd.f32 %v1237_v28, %v1209_v27 }
  0xd3   : > { %v1268_v31 = vpop.f32.mrf.mxu0 }
  0xd4   : > { %v1267_v32 = vadd.f32 %v1266_v25, %v1238_v30 }
  0xd6   : > { %v1296_v33 = vadd.f32 %v1295_v24, %v1267_v32  ;;  %v1210_v34 = vpop.f32.mrf.mxu2 }
  0xd7   : > { %v1211_v35 = vadd.f32 %v1210_v34, %v1182_v62 }
  0xd9   : > { %v1239_v36 = vpop.f32.mrf.mxu3  ;;  %v1300_v37 = vpop.f32.mrf.mxu1 }
  0xda   : > { %v1240_v38 = vadd.f32 %v1239_v36, %v1211_v35 }
  0xdb   : > { %v1271_v39 = vpop.f32.mrf.mxu0 }
  0xdc   : > { %v1269_v40 = vadd.f32 %v1268_v31, %v1240_v38 }
  0xde   : > { %v2812_v41 = vadd.f32 %v1297_v29, %v1269_v40  ;;  %v1213_v42 = vpop.f32.mrf.mxu2 }
  0xdf   : > { %v1214_v43 = vadd.f32 %v1213_v42, %v1185_v14 }
  0xe1   : > { %v1242_v44 = vpop.f32.mrf.mxu3  ;;  %v1302_v45 = vpop.f32.mrf.mxu1 }
  0xe2   : > { %v1243_v46 = vadd.f32 %v1242_v44, %v1214_v43 }
  0xe3   : > { %v1273_v47 = vpop.f32.mrf.mxu0 }
  0xe4   : > { %v1272_v48 = vadd.f32 %v1271_v39, %v1243_v46 }
  0xe6   : > { %v2814_v49 = vadd.f32 %v1300_v37, %v1272_v48  ;;  %v1215_v50 = vpop.f32.mrf.mxu2 }
  0xe7   : > { %v1216_v51 = vadd.f32 %v1215_v50, %v1187_v20 }
  0xe9   : > { %v1244_v52 = vpop.f32.mrf.mxu3  ;;  %v1305_v53 = vpop.f32.mrf.mxu1 }
  0xea   : > { %v1245_v54 = vadd.f32 %v1244_v52, %v1216_v51 }
  0xeb   : > { %v1276_v55 = vpop.f32.mrf.mxu0 }
  0xec   : > { %v1274_v56 = vadd.f32 %v1273_v47, %v1245_v54 }
  0xee   : > { %v2816_v57 = vadd.f32 %v1302_v45, %v1274_v56  ;;  %v1218_v58 = vpop.f32.mrf.mxu2 }
  0xef   : > { %v1219_v60 = vadd.f32 %v1218_v58, %v2803_v59 }
  0xf1   : > { %v1247_v61 = vpop.f32.mrf.mxu3  ;;  %v1307_v62 = vpop.f32.mrf.mxu1 }
  0xf2   : > { %v1248_v63 = vadd.f32 %v1247_v61, %v1219_v60 }
  0xf3   : > { %v1278_v0 = vpop.f32.mrf.mxu0 }
  0xf4   : > { %v1277_v1 = vadd.f32 %v1276_v55, %v1248_v63 }
  0xf6   : > { %v2819_v2 = vadd.f32 %v1305_v53, %v1277_v1  ;;  %v1220_v3 = vpop.f32.mrf.mxu2 }
  0xf7   : > { %v1221_v4 = vadd.f32 %v1220_v3, %v1192_v9 }
  0xf9   : > { %v1249_v5 = vpop.f32.mrf.mxu3  ;;  %v1310_v6 = vpop.f32.mrf.mxu1 }
  0xfa   : > { %v1250_v7 = vadd.f32 %v1249_v5, %v1221_v4 }
  0xfb   : > { %v1281_v8 = vpop.f32.mrf.mxu0 }
  0xfc   : > { %v1279_v10 = vadd.f32 %v1278_v0, %v1250_v7 }
  0xfe   : > { %v2821_v11 = vadd.f32 %v1307_v62, %v1279_v10  ;;  %v1223_v12 = vpop.f32.mrf.mxu2 }
  0xff   : > { %v1224_v13 = vadd.f32 %v1223_v12, %v1195_v17 }
 0x101   : > { %v1252_v59 = vpop.f32.mrf.mxu3  ;;  %v1312_v14 = vpop.f32.mrf.mxu1 }
 0x102   : > { %v1253_v15 = vadd.f32 %v1252_v59, %v1224_v13 }
 0x103   : > { %v1283_v16 = vpop.f32.mrf.mxu0 }
 0x104   : > { %v1282_v18 = vadd.f32 %v1281_v8, %v1253_v15 }
 0x106   : > { %v2824_v19 = vadd.f32 %v1310_v6, %v1282_v18  ;;  %v1225_v20 = vpop.f32.mrf.mxu2 }
 0x107   : > { %v1226_v9 = vadd.f32 %v1225_v20, %v1197_v23 }
 0x109   : > { %v1254_v21 = vpop.f32.mrf.mxu3  ;;  %v2831_v22 = vpop.f32.mrf.mxu1 }
 0x10a   : > { %v1255_v17 = vadd.f32 %v1254_v21, %v1226_v9  ;;  %1571 = vst [vmem:[%s2829_s21] sm:$0xff] %v2831_v22 }
 0x10b   : > { %v1382_v24 = vpop.f32.mrf.mxu0 }
 0x10c   : > { %v1284_v25 = vadd.f32 %v1283_v16, %v1255_v17 }
 0x10e   : > { %v2835_v26 = vadd.f32 %v1312_v14, %v1284_v25  ;;  %v1324_v27 = vpop.f32.mrf.mxu2 }
 0x10f   : > { %v1325_v28 = vadd.f32 %v1324_v27, %v1296_v33 }
 0x111   : > { %v1353_v29 = vpop.f32.mrf.mxu3  ;;  %v1553_v30 = vpop.f32.mrf.mxu1 }
 0x112   : > { %v1354_v31 = vadd.f32 %v1353_v29, %v1325_v28  ;;  %1572 = vst [vmem:[%s2829_s21 + $0x8] sm:$0xff] %v1553_v30  ;;  %v1594_v8 = vmul.f32 %v1553_v30, %v1553_v30  ;;  %v1579_v13 = vadd.f32 %v1553_v30, %v2831_v22 }
 0x113   : > { %v1384_v23 = vpop.f32.mrf.mxu0 }
 0x114   : > { %v1383_v32 = vadd.f32 %v1382_v24, %v1354_v31 }
 0x116   : > { %1402 = vst [vmem:[%s2841_s23] sm:$0xff] %v1383_v32  ;;  %v1326_v34 = vpop.f32.mrf.mxu2  ;;  %v1424_v40 = vmul.f32 %v1383_v32, %v1383_v32 }
 0x117   : > { %v1327_v35 = vadd.f32 %v1326_v34, %v2812_v41 }
 0x119   : > { %v1355_v36 = vpop.f32.mrf.mxu3  ;;  %v1556_v33 = vpop.f32.mrf.mxu1 }
 0x11a   : > { %v1356_v37 = vadd.f32 %v1355_v36, %v1327_v35  ;;  %1573 = vst [vmem:[%s2829_s21 + $0x10] sm:$0xff] %v1556_v33  ;;  %v1595_v12 = vmul.f32 %v1556_v33, %v1556_v33  ;;  %v1580_v20 = vadd.f32 %v1579_v13, %v1556_v33 }
 0x11b   : > { %v1387_v38 = vpop.f32.mrf.mxu0 }
 0x11c   : > { %v1385_v39 = vadd.f32 %v1384_v23, %v1356_v37 }
 0x11e   : > { %1403 = vst [vmem:[%s2841_s23 + $0x8] sm:$0xff] %v1385_v39  ;;  %v1410_v42 = vadd.f32 %v1385_v39, %v1383_v32  ;;  %v1425_v43 = vmul.f32 %v1385_v39, %v1385_v39  ;;  %v1329_v44 = vpop.f32.mrf.mxu2 }
 0x11f   : > { %v1330_v46 = vadd.f32 %v1329_v44, %v2814_v49 }
 0x120   : > { %v1432_v45 = vadd.f32 %v1425_v43, %v1424_v40 }
 0x121   : > { %v1358_v47 = vpop.f32.mrf.mxu3  ;;  %v1558_v48 = vpop.f32.mrf.mxu1 }
 0x122   : > { %v1359_v41 = vadd.f32 %v1358_v47, %v1330_v46  ;;  %1574 = vst [vmem:[%s2829_s21 + $0x18] sm:$0xff] %v1558_v48  ;;  %v1596_v16 = vmul.f32 %v1558_v48, %v1558_v48  ;;  %v1581_v28 = vadd.f32 %v1580_v20, %v1558_v48 }
 0x123   : > { %v1389_v50 = vpop.f32.mrf.mxu0 }
 0x124   : > { %v1388_v51 = vadd.f32 %v1387_v38, %v1359_v41 }
 0x126   : > { %1404 = vst [vmem:[%s2841_s23 + $0x10] sm:$0xff] %v1388_v51  ;;  %v1411_v52 = vadd.f32 %v1410_v42, %v1388_v51  ;;  %v1426_v53 = vmul.f32 %v1388_v51, %v1388_v51  ;;  %v1331_v54 = vpop.f32.mrf.mxu2 }
 0x127   : > { %v1332_v56 = vadd.f32 %v1331_v54, %v2816_v57  ;;  %v1593_v57 = vmul.f32 %v2831_v22, %v2831_v22 }
 0x128   : > { %v1433_v55 = vadd.f32 %v1432_v45, %v1426_v53 }
 0x129   : > { %v1360_v58 = vpop.f32.mrf.mxu3  ;;  %v1561_v60 = vpop.f32.mrf.mxu1  ;;  %v1601_v15 = vadd.f32 %v1594_v8, %v1593_v57 }
 0x12a   : > { %v1361_v61 = vadd.f32 %v1360_v58, %v1332_v56  ;;  %1575 = vst [vmem:[%s2829_s21 + $0x20] sm:$0xff] %v1561_v60  ;;  %v1597_v25 = vmul.f32 %v1561_v60, %v1561_v60  ;;  %v1582_v30 = vadd.f32 %v1581_v28, %v1561_v60 }
 0x12b   : > { %v1392_v62 = vpop.f32.mrf.mxu0  ;;  %v1602_v24 = vadd.f32 %v1601_v15, %v1595_v12 }
 0x12c   : > { %v1390_v49 = vadd.f32 %v1389_v50, %v1361_v61 }
 0x12d   : > { %v1603_v22 = vadd.f32 %v1602_v24, %v1596_v16 }
 0x12e   : > { %1405 = vst [vmem:[%s2841_s23 + $0x18] sm:$0xff] %v1390_v49  ;;  %v1412_v63 = vadd.f32 %v1411_v52, %v1390_v49  ;;  %v1427_v0 = vmul.f32 %v1390_v49, %v1390_v49  ;;  %v1334_v1 = vpop.f32.mrf.mxu2 }
 0x12f   : > { %v1335_v4 = vadd.f32 %v1334_v1, %v2819_v2  ;;  %v1604_v32 = vadd.f32 %v1603_v22, %v1597_v25 }
 0x130   : > { %v1434_v3 = vadd.f32 %v1433_v55, %v1427_v0 }
 0x131   : > { %v1363_v5 = vpop.f32.mrf.mxu3  ;;  %v1563_v6 = vpop.f32.mrf.mxu1 }
 0x132   : > { %v1364_v7 = vadd.f32 %v1363_v5, %v1335_v4  ;;  %1576 = vst [vmem:[%s2829_s21 + $0x28] sm:$0xff] %v1563_v6  ;;  %v1598_v31 = vmul.f32 %v1563_v6, %v1563_v6  ;;  %v1583_v34 = vadd.f32 %v1582_v30, %v1563_v6 }
 0x133   : > { %v1394_v18 = vpop.f32.mrf.mxu0 }
 0x134   : > { %v1393_v10 = vadd.f32 %v1392_v62, %v1364_v7  ;;  %v1605_v37 = vadd.f32 %v1604_v32, %v1598_v31 }
 0x136   : > { %1406 = vst [vmem:[%s2841_s23 + $0x20] sm:$0xff] %v1393_v10  ;;  %v1413_v59 = vadd.f32 %v1412_v63, %v1393_v10  ;;  %v1428_v14 = vmul.f32 %v1393_v10, %v1393_v10  ;;  %v1336_v2 = vpop.f32.mrf.mxu2 }
 0x137   : > { %v1337_v21 = vadd.f32 %v1336_v2, %v2821_v11 }
 0x138   : > { %v1435_v9 = vadd.f32 %v1434_v3, %v1428_v14 }
 0x139   : > { %v1365_v17 = vpop.f32.mrf.mxu3  ;;  %v1566_v27 = vpop.f32.mrf.mxu1 }
 0x13a   : > { %v1366_v29 = vadd.f32 %v1365_v17, %v1337_v21  ;;  %1577 = vst [vmem:[%s2829_s21 + $0x30] sm:$0xff] %v1566_v27  ;;  %v1599_v33 = vmul.f32 %v1566_v27, %v1566_v27  ;;  %v1584_v39 = vadd.f32 %v1583_v34, %v1566_v27 }
 0x13b   : > { %v1397_v43 = vpop.f32.mrf.mxu0 }
 0x13c   : > { %v1395_v23 = vadd.f32 %v1394_v18, %v1366_v29  ;;  %v1606_v45 = vadd.f32 %v1605_v37, %v1599_v33 }
 0x13e   : > { %1407 = vst [vmem:[%s2841_s23 + $0x28] sm:$0xff] %v1395_v23  ;;  %v1414_v35 = vadd.f32 %v1413_v59, %v1395_v23  ;;  %v1429_v36 = vmul.f32 %v1395_v23, %v1395_v23  ;;  %v1339_v11 = vpop.f32.mrf.mxu2 }
 0x13f   : > { %v1340_v40 = vadd.f32 %v1339_v11, %v2824_v19 }
 0x140   : > { %v1436_v38 = vadd.f32 %v1435_v9, %v1429_v36 }
 0x141   : > { %v1368_v42 = vpop.f32.mrf.mxu3  ;;  %v1568_v44 = vpop.f32.mrf.mxu1 }
 0x142   : > { %v1369_v46 = vadd.f32 %v1368_v42, %v1340_v40  ;;  %1578 = vst [vmem:[%s2829_s21 + $0x38] sm:$0xff] %v1568_v44  ;;  %v1585_v47 = vadd.f32 %v1584_v39, %v1568_v44  ;;  %v1600_v48 = vmul.f32 %v1568_v44, %v1568_v44 }
 0x143   : > { %v1399_v1 = vpop.f32.mrf.mxu0 }
 0x144   : > { %v1398_v41 = vadd.f32 %v1397_v43, %v1369_v46  ;;  %v1586_v50 = vrot.slane %v1585_v47, 4  ;;  %v1607_v51 = vadd.f32 %v1606_v45, %v1600_v48 }
 0x146   : > { %1408 = vst [vmem:[%s2841_s23 + $0x30] sm:$0xff] %v1398_v41  ;;  %v1415_v52 = vadd.f32 %v1414_v35, %v1398_v41  ;;  %v1430_v53 = vmul.f32 %v1398_v41, %v1398_v41  ;;  %v1587_v19 = vadd.f32 %v1586_v50, %v1585_v47  ;;  %v1608_v54 = vrot.slane %v1607_v51, 4  ;;  %v1341_v55 = vpop.f32.mrf.mxu2 }
 0x147   : > { %v1342_v61 = vadd.f32 %v1341_v55, %v2835_v26 }
 0x148   : > { %v1437_v56 = vadd.f32 %v1436_v38, %v1430_v53  ;;  %v1588_v58 = vrot.slane %v1587_v19, 2  ;;  %v1609_v60 = vadd.f32 %v1608_v54, %v1607_v51 }
 0x149   : > { %v1370_v49 = vpop.f32.mrf.mxu3 }
 0x14a   : > { %v1589_v62 = vadd.f32 %v1588_v58, %v1587_v19  ;;  %v1610_v63 = vrot.slane %v1609_v60, 2  ;;  %v1371_v0 = vadd.f32 %v1370_v49, %v1342_v61 }
 0x14c   : > { %v1590_v3 = vrot.slane %v1589_v62, 1  ;;  %v1611_v4 = vadd.f32 %v1610_v63, %v1609_v60  ;;  %v1400_v5 = vadd.f32 %v1399_v1, %v1371_v0 }
 0x14e   : > { %v1591_v6 = vadd.f32 %v1590_v3, %v1589_v62  ;;  %v1612_v7 = vrot.slane %v1611_v4, 1  ;;  %1409 = vst [vmem:[%s2841_s23 + $0x38] sm:$0xff] %v1400_v5  ;;  %v1416_v57 = vadd.f32 %v1415_v52, %v1400_v5  ;;  %v1431_v8 = vmul.f32 %v1400_v5, %v1400_v5 }
 0x150   : > { %1592 = vst [vmem:[%s340_s29] sm:$0x1] %v1591_v6  ;;  %v1613_v26 = vadd.f32 %v1612_v7, %v1611_v4  ;;  %v1417_v10 = vrot.slane %v1416_v57, 4  ;;  %v1438_v12 = vadd.f32 %v1437_v56, %v1431_v8 }
 0x152   : > { %1614 = vst [vmem:[%s340_s29 + $0x1] sm:$0x1] %v1613_v26  ;;  %v1418_v13 = vadd.f32 %v1417_v10, %v1416_v57  ;;  %v1439_v59 = vrot.slane %v1438_v12, 4 }
 0x154   : > { %v1419_v14 = vrot.slane %v1418_v13, 2  ;;  %v1440_v15 = vadd.f32 %v1439_v59, %v1438_v12 }
 0x156   : > { %v1420_v16 = vadd.f32 %v1419_v14, %v1418_v13  ;;  %v1441_v18 = vrot.slane %v1440_v15, 2 }
 0x158   : > { %v1421_v2 = vrot.slane %v1420_v16, 1  ;;  %v1442_v20 = vadd.f32 %v1441_v18, %v1440_v15 }
 0x15a   : > { %v1422_v9 = vadd.f32 %v1421_v2, %v1420_v16  ;;  %v1443_v21 = vrot.slane %v1442_v20, 1 }
 0x15c   : > { %1423 = vst [vmem:[%s336_s8] sm:$0x1] %v1422_v9  ;;  %v1444_v17 = vadd.f32 %v1443_v21, %v1442_v20 }
 0x15e   : > { %1445 = vst [vmem:[%s336_s8 + $0x1] sm:$0x1] %v1444_v17 }
 0x15f PF: > { %s18_s24 = sadd.s32 1, %s2427_s24  }
 0x160   : > { %p15_p5 = scmp.ge.s32.totalorder %s18_s24, 4  }
 0x162   :  { %17 = sbr.rel (!%p15_p5) target bundleno = 1 (0x1), region = 105 }

</bundles_post_ra>
